<compile_context>
chip_gen: v6e
topology: v6e:2x2x1
jax: 0.10.0
libtpu: 0.0.40
codegen_flags: <defaults>
</compile_context>

<pallas_src>
import functools

import jax
import jax.numpy as jnp
from jax import lax
from jax.experimental import pallas as pl
from jax.experimental.pallas import tpu as pltpu

EPS = 1e-5  # nn.BatchNorm2d default eps


# ------------------------------ Pallas kernels ------------------------------

def _make_conv_stats_kernel(offsets, p1, c_src, fuse_bn_relu):
    """3x3 conv as ONE K=k*k*C matmul + masked per-channel sum/sumsq partials.

    Activation layout per grid step: (C, P1) with P1 = Hp*Wp padded-flat pixels
    of ONE image on the lane axis.  `offsets[t]` is the static lane shift of
    conv tap t.  If `fuse_bn_relu`, the input is first normalized with folded
    per-channel scale/shift, ReLU'd and masked (the zeroed padded ring is
    exactly this conv's zero padding).
    """
    n_taps = len(offsets)

    def kernel(*refs):
        if fuse_bn_relu:
            (src_ref, a_ref, b_ref, mask_ref, w_ref,
             y_ref, s_ref, ss_ref, cat_ref) = refs
        else:
            (src_ref, mask_ref, w_ref,
             y_ref, s_ref, ss_ref, cat_ref) = refs

        m = mask_ref[...]                                    # (1, P1) {0,1} f32

        if fuse_bn_relu:
            # BN1 (folded scale/shift) + ReLU + mask, then bf16 for the MXU.
            h = jnp.maximum(src_ref[...] * a_ref[...] + b_ref[...], 0.0) * m
            h = h.astype(jnp.bfloat16)
            src = lambda lo, hi: h[:, lo:hi]
        else:
            src = lambda lo, hi: src_ref[:, lo:hi]           # already bf16

        # Build the stacked-tap operand (k*k*C, P1): the conv becomes a single
        # matmul with K = k*k*C (fills the MXU contraction) instead of k*k
        # small-K matmuls + (k*k - 1) full-width f32 adds.
        for t in range(n_taps):
            off = offsets[t]
            lo = max(0, -off)
            hi = p1 - max(0, off)
            r0, r1 = t * c_src, (t + 1) * c_src
            # Zero only the tiny static band edges (they only feed the masked
            # padded-ring outputs); never zero the whole scratch.
            if lo > 0:
                cat_ref[r0:r1, 0:lo] = jnp.zeros((c_src, lo), cat_ref.dtype)
            if hi < p1:
                cat_ref[r0:r1, hi:p1] = jnp.zeros((c_src, p1 - hi), cat_ref.dtype)
            cat_ref[r0:r1, lo:hi] = src(lo + off, hi + off)

        y = jnp.dot(w_ref[...], cat_ref[...],
                    preferred_element_type=jnp.float32)      # (C_out, P1) f32

        # Masked per-channel partial statistics for the two-pass BatchNorm.
        ym = y * m
        s_ref[...] = jnp.sum(ym, axis=1, keepdims=True)
        ss_ref[...] = jnp.sum(ym * y, axis=1, keepdims=True)
        y_ref[...] = y

    return kernel


def _make_bn_residual_relu_kernel(has_proj):
    """Folded BN2 + (1x1 projection | identity) residual + ReLU."""
    if has_proj:
        def kernel(y_ref, a_ref, b_ref, x_ref, wm_ref, bm_ref, o_ref):
            res = jnp.dot(wm_ref[...], x_ref[...],
                          preferred_element_type=jnp.float32) + bm_ref[...]
            o_ref[...] = jnp.maximum(
                y_ref[...] * a_ref[...] + b_ref[...] + res, 0.0)
    else:
        def kernel(y_ref, a_ref, b_ref, x_ref, o_ref):
            o_ref[...] = jnp.maximum(
                y_ref[...] * a_ref[...] + b_ref[...] + x_ref[...], 0.0)
    return kernel


# ------------------------------- helpers -------------------------------------

def _nbytes(shape, dtype):
    n = 1
    for d in shape:
        n *= int(d)
    return n * jnp.dtype(dtype).itemsize


def _compiler_params(block_bytes, scratch_bytes):
    # Double-buffered blocks + scratch, generous headroom, capped below v7x's
    # 64 MiB physical VMEM (default scoped limits are 16/32 MiB).
    need = 2 * block_bytes + scratch_bytes
    limit = int(min(max(3 * need + (4 << 20), 8 << 20), 64 << 20))
    return pltpu.CompilerParams(
        dimension_semantics=("parallel",),   # batch tiles split across v7x TCs
        vmem_limit_bytes=limit)


# ------------------------------- JAX wrapper ---------------------------------

def init_params(key, input_size, hidden_size, output_size, kernel_size=3):
    ks = jax.random.split(key, 10)
    k = kernel_size
    p = {
        "w1": jax.random.normal(ks[0], (hidden_size, input_size, k, k), jnp.float32) * 0.1,
        "b1": jax.random.normal(ks[1], (hidden_size,), jnp.float32) * 0.1,
        "w2": jax.random.normal(ks[2], (output_size, hidden_size, k, k), jnp.float32) * 0.1,
        "b2": jax.random.normal(ks[3], (output_size,), jnp.float32) * 0.1,
        "gamma1": 1.0 + 0.1 * jax.random.normal(ks[4], (hidden_size,), jnp.float32),
        "beta1": 0.1 * jax.random.normal(ks[5], (hidden_size,), jnp.float32),
        "gamma2": 1.0 + 0.1 * jax.random.normal(ks[6], (output_size,), jnp.float32),
        "beta2": 0.1 * jax.random.normal(ks[7], (output_size,), jnp.float32),
    }
    if input_size != output_size:
        p["wm"] = jax.random.normal(ks[8], (output_size, input_size, 1, 1), jnp.float32) * 0.1
        p["bm"] = jax.random.normal(ks[9], (output_size,), jnp.float32) * 0.1
    return p


@functools.partial(jax.jit, static_argnames=("kernel_size", "padding"))
def resnet_block_forward(params, x, kernel_size=3, padding=1):
    """x: (N, C_in, H, W) float32 -> (N, C_out, H, W) float32 (training-mode BN)."""
    n, c_in, h, w = x.shape
    k, pad = kernel_size, padding
    assert 2 * pad == k - 1, "shift-matmul conv assumes stride=1 'same' conv"
    c_hid = params["w1"].shape[0]
    c_out = params["w2"].shape[0]
    has_proj = "wm" in params

    hp, wp = h + 2 * pad, w + 2 * pad
    p1 = hp * wp                      # padded-flat pixels per image (lane axis)
    kk1, kk2 = k * k * c_in, k * k * c_hid

    # Pack x ONCE: zero-pad spatially, flatten to (N, C_in, Hp*Wp); bf16 copy
    # for the conv / projection MXU operands (halves x DMA).
    x_pack = jnp.pad(x, ((0, 0), (0, 0), (pad, pad), (pad, pad))
                     ).reshape(n, c_in, p1)
    x_bf = x_pack.astype(jnp.bfloat16)

    # 1.0 at real output pixels, 0.0 on the padded ring (same for all images).
    mask = jnp.pad(jnp.ones((h, w), jnp.float32),
                   ((pad, pad), (pad, pad))).reshape(1, p1)

    # Static lane shift of each conv tap and the matching stacked weights
    # (C_out, k*k*C_in) so each conv is one K = k*k*C_in matmul.
    offsets = tuple((dy - pad) * wp + (dx - pad)
                    for dy in range(k) for dx in range(k))
    w1cat = params["w1"].transpose(0, 2, 3, 1).reshape(c_hid, kk1).astype(jnp.bfloat16)
    w2cat = params["w2"].transpose(0, 2, 3, 1).reshape(c_out, kk2).astype(jnp.bfloat16)

    cnt = jnp.float32(n * h * w)

    def folded_bn(sum_p, sumsq_p, gamma, beta, c):
        s = jnp.sum(sum_p, axis=0)[:, 0]
        ss = jnp.sum(sumsq_p, axis=0)[:, 0]
        mean = s / cnt
        # TODO(synk): use a shifted two-pass variance at production scale
        # (E[y^2] - mean^2 is cancellation-prone when |mean| >> std).
        var = ss / cnt - mean * mean
        scale = gamma * lax.rsqrt(var + EPS)
        shift = beta - mean * scale
        return scale.reshape(c, 1), shift.reshape(c, 1)

    # --------------------------- pass 1: conv1 ------------------------------
    blk1 = (_nbytes((c_in, p1), jnp.bfloat16) + _nbytes((1, p1), jnp.float32)
            + _nbytes((c_hid, kk1), jnp.bfloat16)
            + _nbytes((c_hid, p1), jnp.float32)
            + 2 * _nbytes((c_hid, 1), jnp.float32))
    y1, s1, ss1 = pl.pallas_call(
        _make_conv_stats_kernel(offsets, p1, c_in, fuse_bn_relu=False),
        grid=(n,),
        in_specs=[
            pl.BlockSpec((None, c_in, p1), lambda i: (i, 0, 0)),   # x (bf16)
            pl.BlockSpec((1, p1), lambda i: (0, 0)),               # mask
            pl.BlockSpec((c_hid, kk1), lambda i: (0, 0)),          # w1 stacked
        ],
        out_specs=[
            pl.BlockSpec((None, c_hid, p1), lambda i: (i, 0, 0)),  # y1
            pl.BlockSpec((None, c_hid, 1), lambda i: (i, 0, 0)),   # sum partial
            pl.BlockSpec((None, c_hid, 1), lambda i: (i, 0, 0)),   # sumsq partial
        ],
        out_shape=(
            jax.ShapeDtypeStruct((n, c_hid, p1), jnp.float32),
            jax.ShapeDtypeStruct((n, c_hid, 1), jnp.float32),
            jax.ShapeDtypeStruct((n, c_hid, 1), jnp.float32),
        ),
        scratch_shapes=[pltpu.VMEM((kk1, p1), jnp.bfloat16)],
        compiler_params=_compiler_params(blk1, _nbytes((kk1, p1), jnp.bfloat16)),
        cost_estimate=pl.CostEstimate(
            flops=2 * n * c_hid * kk1 * p1, transcendentals=0,
            bytes_accessed=n * blk1),
    )(x_bf, mask, w1cat)

    # Conv biases b1/b2 are omitted in-kernel: training-mode BN subtracts the
    # batch mean, which cancels a per-channel constant exactly.  (Would NOT
    # hold for inference-mode BN with running stats.)
    a1, b1 = folded_bn(s1, ss1, params["gamma1"], params["beta1"], c_hid)

    # ---------------------- pass 2: bn1 + relu + conv2 ----------------------
    blk2 = (_nbytes((c_hid, p1), jnp.float32)
            + 2 * _nbytes((c_hid, 1), jnp.float32)
            + _nbytes((1, p1), jnp.float32)
            + _nbytes((c_out, kk2), jnp.bfloat16)
            + _nbytes((c_out, p1), jnp.float32)
            + 2 * _nbytes((c_out, 1), jnp.float32))
    y2, s2, ss2 = pl.pallas_call(
        _make_conv_stats_kernel(offsets, p1, c_hid, fuse_bn_relu=True),
        grid=(n,),
        in_specs=[
            pl.BlockSpec((None, c_hid, p1), lambda i: (i, 0, 0)),  # y1
            pl.BlockSpec((c_hid, 1), lambda i: (0, 0)),            # bn1 scale
            pl.BlockSpec((c_hid, 1), lambda i: (0, 0)),            # bn1 shift
            pl.BlockSpec((1, p1), lambda i: (0, 0)),               # mask
            pl.BlockSpec((c_out, kk2), lambda i: (0, 0)),          # w2 stacked
        ],
        out_specs=[
            pl.BlockSpec((None, c_out, p1), lambda i: (i, 0, 0)),  # y2
            pl.BlockSpec((None, c_out, 1), lambda i: (i, 0, 0)),
            pl.BlockSpec((None, c_out, 1), lambda i: (i, 0, 0)),
        ],
        out_shape=(
            jax.ShapeDtypeStruct((n, c_out, p1), jnp.float32),
            jax.ShapeDtypeStruct((n, c_out, 1), jnp.float32),
            jax.ShapeDtypeStruct((n, c_out, 1), jnp.float32),
        ),
        scratch_shapes=[pltpu.VMEM((kk2, p1), jnp.bfloat16)],
        compiler_params=_compiler_params(blk2, _nbytes((kk2, p1), jnp.bfloat16)),
        cost_estimate=pl.CostEstimate(
            flops=2 * n * c_out * kk2 * p1 + 6 * n * c_hid * p1,
            transcendentals=0, bytes_accessed=n * blk2),
    )(y1, a1, b1, mask, w2cat)

    a2, b2 = folded_bn(s2, ss2, params["gamma2"], params["beta2"], c_out)

    # --------------- pass 3: bn2 + residual (+1x1 proj) + relu --------------
    if has_proj:
        wm = params["wm"].reshape(c_out, c_in).astype(jnp.bfloat16)
        bm = params["bm"].reshape(c_out, 1).astype(jnp.float32)
        res_args = (x_bf, wm, bm)
        res_specs = [
            pl.BlockSpec((None, c_in, p1), lambda i: (i, 0, 0)),
            pl.BlockSpec((c_out, c_in), lambda i: (0, 0)),
            pl.BlockSpec((c_out, 1), lambda i: (0, 0)),
        ]
        res_bytes = (_nbytes((c_in, p1), jnp.bfloat16)
                     + _nbytes((c_out, c_in), jnp.bfloat16)
                     + _nbytes((c_out, 1), jnp.float32))
        res_flops = 2 * n * c_out * c_in * p1
    else:
        res_args = (x_pack,)         # identity residual in f32 (exactly the input)
        res_specs = [pl.BlockSpec((None, c_out, p1), lambda i: (i, 0, 0))]
        res_bytes = _nbytes((c_out, p1), jnp.float32)
        res_flops = 0

    blk3 = (_nbytes((c_out, p1), jnp.float32)
            + 2 * _nbytes((c_out, 1), jnp.float32)
            + res_bytes + _nbytes((c_out, p1), jnp.float32))
    o_flat = pl.pallas_call(
        _make_bn_residual_relu_kernel(has_proj),
        grid=(n,),
        in_specs=[
            pl.BlockSpec((None, c_out, p1), lambda i: (i, 0, 0)),  # y2
            pl.BlockSpec((c_out, 1), lambda i: (0, 0)),            # bn2 scale
            pl.BlockSpec((c_out, 1), lambda i: (0, 0)),            # bn2 shift
        ] + res_specs,
        out_specs=pl.BlockSpec((None, c_out, p1), lambda i: (i, 0, 0)),
        # TODO(synk): emit bf16 here if the downstream layer accepts it
        # (halves the writeback of the largest tensor).
        out_shape=jax.ShapeDtypeStruct((n, c_out, p1), jnp.float32),
        compiler_params=_compiler_params(blk3, 0),
        cost_estimate=pl.CostEstimate(
            flops=res_flops + 4 * n * c_out * p1, transcendentals=0,
            bytes_accessed=n * blk3),
    )(y2, a2, b2, *res_args)

    # (N, C_out, Hp*Wp) -> (N, C_out, H, W): drop the padded ring (its columns
    # hold unmasked garbage by design and are never consumed).
    return o_flat.reshape(n, c_out, hp, wp)[:, :, pad:pad + h, pad:pad + w]


# ----------------------------- pure-JAX reference ----------------------------
# Matches the PyTorch module; conv operands cast to bf16 with f32 accumulation
# to mirror the kernel's MXU precision policy (numerically benign: BN
# renormalizes per channel right after each conv).

def _ref_conv(x, wgt, b, pad):
    y = lax.conv_general_dilated(
        x.astype(jnp.bfloat16), wgt.astype(jnp.bfloat16),
        window_strides=(1, 1), padding=[(pad, pad), (pad, pad)],
        dimension_numbers=("NCHW", "OIHW", "NCHW"),
        preferred_element_type=jnp.float32)
    return y + b.reshape(1, -1, 1, 1)


def _ref_bn(y, g, bt):
    mean = jnp.mean(y, axis=(0, 2, 3), keepdims=True)
    var = jnp.mean((y - mean) ** 2, axis=(0, 2, 3), keepdims=True)
    return g.reshape(1, -1, 1, 1) * (y - mean) * lax.rsqrt(var + EPS) \
        + bt.reshape(1, -1, 1, 1)


def resnet_block_ref(params, x, padding=1):
    h1 = jnp.maximum(_ref_bn(_ref_conv(x, params["w1"], params["b1"], padding),
                             params["gamma1"], params["beta1"]), 0.0)
    y = _ref_bn(_ref_conv(h1, params["w2"], params["b2"], padding),
                params["gamma2"], params["beta2"])
    res = _ref_conv(x, params["wm"], params["bm"], 0) if "wm" in params else x
    return jnp.maximum(y + res, 0.0)


if __name__ == "__main__":
    key = jax.random.PRNGKey(0)
    kx, kp, kp2 = jax.random.split(key, 3)
    N, C_IN, H, W = 2, 4, 16, 16
    HIDDEN, C_OUT = 8, 8

    # --- projection path (input_size != output_size) ---
    x = jax.random.normal(kx, (N, C_IN, H, W), jnp.float32)
    params = init_params(kp, C_IN, HIDDEN, C_OUT)
    out = jax.block_until_ready(resnet_block_forward(params, x))
    ref = resnet_block_ref(params, x)
    assert out.shape == (N, C_OUT, H, W)
    err = float(jnp.max(jnp.abs(out - ref)))
    assert jnp.allclose(out, ref, rtol=2e-3, atol=2e-3), f"proj path max err {err}"

    # --- identity residual path (input_size == output_size) ---
    x2 = jax.random.normal(kx, (N, C_OUT, H, W), jnp.float32)
    params_id = init_params(kp2, C_OUT, HIDDEN, C_OUT)
    out2 = jax.block_until_ready(resnet_block_forward(params_id, x2))
    ref2 = resnet_block_ref(params_id, x2)
    err2 = float(jnp.max(jnp.abs(out2 - ref2)))
    assert jnp.allclose(out2, ref2, rtol=2e-3, atol=2e-3), f"identity path max err {err2}"

    print("KERNEL_OK")
</pallas_src>

<mosaic_0001>
module attributes {stable_mosaic.version = 11 : i64} {
  func.func @kernel(%arg0: i32, %arg1: memref<1x4x324xbf16, #tpu.memory_space<vmem>>, %arg2: memref<1x324xf32, #tpu.memory_space<vmem>>, %arg3: memref<8x36xbf16, #tpu.memory_space<vmem>>, %arg4: memref<1x8x324xf32, #tpu.memory_space<vmem>>, %arg5: memref<1x8x1xf32, #tpu.memory_space<vmem>>, %arg6: memref<1x8x1xf32, #tpu.memory_space<vmem>>, %arg7: memref<36x324xbf16, #tpu.memory_space<vmem>>) attributes {dimension_semantics = [#tpu.dimension_semantics<parallel>], iteration_bounds = array<i64: 2>, scalar_prefetch = 0 : i64, scratch_operands = 1 : i64, tpu.core_type = #tpu.core_type<tc>, window_params = [{transform_indices = @transform_0, window_bounds = array<i64: 1, 4, 324>}, {pipeline_mode = #tpu.pipeline_mode<synchronous>, transform_indices = @transform_1, window_bounds = array<i64: 1, 324>}, {pipeline_mode = #tpu.pipeline_mode<synchronous>, transform_indices = @transform_2, window_bounds = array<i64: 8, 36>}, {transform_indices = @transform_3, window_bounds = array<i64: 1, 8, 324>}, {transform_indices = @transform_4, window_bounds = array<i64: 1, 8, 1>}, {transform_indices = @transform_5, window_bounds = array<i64: 1, 8, 1>}]} {
    %c0 = arith.constant 0 : index
    %c0_0 = arith.constant 0 : index
    %0 = vector.load %arg2[%c0, %c0_0] : memref<1x324xf32, #tpu.memory_space<vmem>>, vector<1x324xf32>
    %cst = arith.constant 0.000000e+00 : bf16
    %1 = vector.broadcast %cst : bf16 to vector<4x19xbf16>
    %c0_1 = arith.constant 0 : index
    %c0_2 = arith.constant 0 : index
    %2 = vector.load %arg7[%c0_1, %c0_2] : memref<36x324xbf16, #tpu.memory_space<vmem>>, vector<4x19xbf16>
    tpu.vector_store %arg7[%c0_1, %c0_2], %1 {strides = array<i32>} : memref<36x324xbf16, #tpu.memory_space<vmem>>, vector<4x19xbf16>,
    %c0_3 = arith.constant 0 : index
    %c0_4 = arith.constant 0 : index
    %c0_5 = arith.constant 0 : index
    %3 = vector.load %arg1[%c0_3, %c0_4, %c0_5] : memref<1x4x324xbf16, #tpu.memory_space<vmem>>, vector<1x4x305xbf16>
    %4 = vector.shape_cast %3 : vector<1x4x305xbf16> to vector<4x305xbf16>
    %c0_6 = arith.constant 0 : index
    %c19 = arith.constant 19 : index
    %5 = vector.load %arg7[%c0_6, %c19] : memref<36x324xbf16, #tpu.memory_space<vmem>>, vector<4x305xbf16>
    tpu.vector_store %arg7[%c0_6, %c19], %4 {strides = array<i32>} : memref<36x324xbf16, #tpu.memory_space<vmem>>, vector<4x305xbf16>,
    %cst_7 = arith.constant 0.000000e+00 : bf16
    %6 = vector.broadcast %cst_7 : bf16 to vector<4x18xbf16>
    %c4 = arith.constant 4 : index
    %c0_8 = arith.constant 0 : index
    %7 = vector.load %arg7[%c4, %c0_8] : memref<36x324xbf16, #tpu.memory_space<vmem>>, vector<4x18xbf16>
    tpu.vector_store %arg7[%c4, %c0_8], %6 {strides = array<i32>} : memref<36x324xbf16, #tpu.memory_space<vmem>>, vector<4x18xbf16>,
    %c0_9 = arith.constant 0 : index
    %c0_10 = arith.constant 0 : index
    %c0_11 = arith.constant 0 : index
    %8 = vector.load %arg1[%c0_9, %c0_10, %c0_11] : memref<1x4x324xbf16, #tpu.memory_space<vmem>>, vector<1x4x306xbf16>
    %9 = vector.shape_cast %8 : vector<1x4x306xbf16> to vector<4x306xbf16>
    %c4_12 = arith.constant 4 : index
    %c18 = arith.constant 18 : index
    %10 = vector.load %arg7[%c4_12, %c18] : memref<36x324xbf16, #tpu.memory_space<vmem>>, vector<4x306xbf16>
    tpu.vector_store %arg7[%c4_12, %c18], %9 {strides = array<i32>} : memref<36x324xbf16, #tpu.memory_space<vmem>>, vector<4x306xbf16>,
    %cst_13 = arith.constant 0.000000e+00 : bf16
    %11 = vector.broadcast %cst_13 : bf16 to vector<4x17xbf16>
    %c8 = arith.constant 8 : index
    %c0_14 = arith.constant 0 : index
    %12 = vector.load %arg7[%c8, %c0_14] : memref<36x324xbf16, #tpu.memory_space<vmem>>, vector<4x17xbf16>
    tpu.vector_store %arg7[%c8, %c0_14], %11 {strides = array<i32>} : memref<36x324xbf16, #tpu.memory_space<vmem>>, vector<4x17xbf16>,
    %c0_15 = arith.constant 0 : index
    %c0_16 = arith.constant 0 : index
    %c0_17 = arith.constant 0 : index
    %13 = vector.load %arg1[%c0_15, %c0_16, %c0_17] : memref<1x4x324xbf16, #tpu.memory_space<vmem>>, vector<1x4x307xbf16>
    %14 = vector.shape_cast %13 : vector<1x4x307xbf16> to vector<4x307xbf16>
    %c8_18 = arith.constant 8 : index
    %c17 = arith.constant 17 : index
    %15 = vector.load %arg7[%c8_18, %c17] : memref<36x324xbf16, #tpu.memory_space<vmem>>, vector<4x307xbf16>
    tpu.vector_store %arg7[%c8_18, %c17], %14 {strides = array<i32>} : memref<36x324xbf16, #tpu.memory_space<vmem>>, vector<4x307xbf16>,
    %cst_19 = arith.constant 0.000000e+00 : bf16
    %16 = vector.broadcast %cst_19 : bf16 to vector<4x1xbf16>
    %c12 = arith.constant 12 : index
    %c0_20 = arith.constant 0 : index
    %17 = vector.load %arg7[%c12, %c0_20] : memref<36x324xbf16, #tpu.memory_space<vmem>>, vector<4x1xbf16>
    tpu.vector_store %arg7[%c12, %c0_20], %16 {strides = array<i32>} : memref<36x324xbf16, #tpu.memory_space<vmem>>, vector<4x1xbf16>,
    %c0_21 = arith.constant 0 : index
    %c0_22 = arith.constant 0 : index
    %c0_23 = arith.constant 0 : index
    %18 = vector.load %arg1[%c0_21, %c0_22, %c0_23] : memref<1x4x324xbf16, #tpu.memory_space<vmem>>, vector<1x4x323xbf16>
    %19 = vector.shape_cast %18 : vector<1x4x323xbf16> to vector<4x323xbf16>
    %c12_24 = arith.constant 12 : index
    %c1 = arith.constant 1 : index
    %20 = vector.load %arg7[%c12_24, %c1] : memref<36x324xbf16, #tpu.memory_space<vmem>>, vector<4x323xbf16>
    tpu.vector_store %arg7[%c12_24, %c1], %19 {strides = array<i32>} : memref<36x324xbf16, #tpu.memory_space<vmem>>, vector<4x323xbf16>,
    %c0_25 = arith.constant 0 : index
    %c0_26 = arith.constant 0 : index
    %c0_27 = arith.constant 0 : index
    %21 = vector.load %arg1[%c0_25, %c0_26, %c0_27] : memref<1x4x324xbf16, #tpu.memory_space<vmem>>, vector<1x4x324xbf16>
    %22 = vector.shape_cast %21 : vector<1x4x324xbf16> to vector<4x324xbf16>
    %c16 = arith.constant 16 : index
    %c0_28 = arith.constant 0 : index
    %23 = vector.load %arg7[%c16, %c0_28] : memref<36x324xbf16, #tpu.memory_space<vmem>>, vector<4x324xbf16>
    tpu.vector_store %arg7[%c16, %c0_28], %22 {strides = array<i32>} : memref<36x324xbf16, #tpu.memory_space<vmem>>, vector<4x324xbf16>,
    %cst_29 = arith.constant 0.000000e+00 : bf16
    %24 = vector.broadcast %cst_29 : bf16 to vector<4x1xbf16>
    %c20 = arith.constant 20 : index
    %c323 = arith.constant 323 : index
    %25 = vector.load %arg7[%c20, %c323] : memref<36x324xbf16, #tpu.memory_space<vmem>>, vector<4x1xbf16>
    tpu.vector_store %arg7[%c20, %c323], %24 {strides = array<i32>} : memref<36x324xbf16, #tpu.memory_space<vmem>>, vector<4x1xbf16>,
    %c0_30 = arith.constant 0 : index
    %c0_31 = arith.constant 0 : index
    %c1_32 = arith.constant 1 : index
    %26 = vector.load %arg1[%c0_30, %c0_31, %c1_32] : memref<1x4x324xbf16, #tpu.memory_space<vmem>>, vector<1x4x323xbf16>
    %27 = vector.shape_cast %26 : vector<1x4x323xbf16> to vector<4x323xbf16>
    %c20_33 = arith.constant 20 : index
    %c0_34 = arith.constant 0 : index
    %28 = vector.load %arg7[%c20_33, %c0_34] : memref<36x324xbf16, #tpu.memory_space<vmem>>, vector<4x323xbf16>
    tpu.vector_store %arg7[%c20_33, %c0_34], %27 {strides = array<i32>} : memref<36x324xbf16, #tpu.memory_space<vmem>>, vector<4x323xbf16>,
    %cst_35 = arith.constant 0.000000e+00 : bf16
    %29 = vector.broadcast %cst_35 : bf16 to vector<4x17xbf16>
    %c24 = arith.constant 24 : index
    %c307 = arith.constant 307 : index
    %30 = vector.load %arg7[%c24, %c307] : memref<36x324xbf16, #tpu.memory_space<vmem>>, vector<4x17xbf16>
    tpu.vector_store %arg7[%c24, %c307], %29 {strides = array<i32>} : memref<36x324xbf16, #tpu.memory_space<vmem>>, vector<4x17xbf16>,
    %c0_36 = arith.constant 0 : index
    %c0_37 = arith.constant 0 : index
    %c17_38 = arith.constant 17 : index
    %31 = vector.load %arg1[%c0_36, %c0_37, %c17_38] : memref<1x4x324xbf16, #tpu.memory_space<vmem>>, vector<1x4x307xbf16>
    %32 = vector.shape_cast %31 : vector<1x4x307xbf16> to vector<4x307xbf16>
    %c24_39 = arith.constant 24 : index
    %c0_40 = arith.constant 0 : index
    %33 = vector.load %arg7[%c24_39, %c0_40] : memref<36x324xbf16, #tpu.memory_space<vmem>>, vector<4x307xbf16>
    tpu.vector_store %arg7[%c24_39, %c0_40], %32 {strides = array<i32>} : memref<36x324xbf16, #tpu.memory_space<vmem>>, vector<4x307xbf16>,
    %cst_41 = arith.constant 0.000000e+00 : bf16
    %34 = vector.broadcast %cst_41 : bf16 to vector<4x18xbf16>
    %c28 = arith.constant 28 : index
    %c306 = arith.constant 306 : index
    %35 = vector.load %arg7[%c28, %c306] : memref<36x324xbf16, #tpu.memory_space<vmem>>, vector<4x18xbf16>
    tpu.vector_store %arg7[%c28, %c306], %34 {strides = array<i32>} : memref<36x324xbf16, #tpu.memory_space<vmem>>, vector<4x18xbf16>,
    %c0_42 = arith.constant 0 : index
    %c0_43 = arith.constant 0 : index
    %c18_44 = arith.constant 18 : index
    %36 = vector.load %arg1[%c0_42, %c0_43, %c18_44] : memref<1x4x324xbf16, #tpu.memory_space<vmem>>, vector<1x4x306xbf16>
    %37 = vector.shape_cast %36 : vector<1x4x306xbf16> to vector<4x306xbf16>
    %c28_45 = arith.constant 28 : index
    %c0_46 = arith.constant 0 : index
    %38 = vector.load %arg7[%c28_45, %c0_46] : memref<36x324xbf16, #tpu.memory_space<vmem>>, vector<4x306xbf16>
    tpu.vector_store %arg7[%c28_45, %c0_46], %37 {strides = array<i32>} : memref<36x324xbf16, #tpu.memory_space<vmem>>, vector<4x306xbf16>,
    %cst_47 = arith.constant 0.000000e+00 : bf16
    %39 = vector.broadcast %cst_47 : bf16 to vector<4x19xbf16>
    %c32 = arith.constant 32 : index
    %c305 = arith.constant 305 : index
    %40 = vector.load %arg7[%c32, %c305] : memref<36x324xbf16, #tpu.memory_space<vmem>>, vector<4x19xbf16>
    tpu.vector_store %arg7[%c32, %c305], %39 {strides = array<i32>} : memref<36x324xbf16, #tpu.memory_space<vmem>>, vector<4x19xbf16>,
    %c0_48 = arith.constant 0 : index
    %c0_49 = arith.constant 0 : index
    %c19_50 = arith.constant 19 : index
    %41 = vector.load %arg1[%c0_48, %c0_49, %c19_50] : memref<1x4x324xbf16, #tpu.memory_space<vmem>>, vector<1x4x305xbf16>
    %42 = vector.shape_cast %41 : vector<1x4x305xbf16> to vector<4x305xbf16>
    %c32_51 = arith.constant 32 : index
    %c0_52 = arith.constant 0 : index
    %43 = vector.load %arg7[%c32_51, %c0_52] : memref<36x324xbf16, #tpu.memory_space<vmem>>, vector<4x305xbf16>
    tpu.vector_store %arg7[%c32_51, %c0_52], %42 {strides = array<i32>} : memref<36x324xbf16, #tpu.memory_space<vmem>>, vector<4x305xbf16>,
    %c0_53 = arith.constant 0 : index
    %c0_54 = arith.constant 0 : index
    %44 = vector.load %arg3[%c0_53, %c0_54] : memref<8x36xbf16, #tpu.memory_space<vmem>>, vector<8x36xbf16>
    %c0_55 = arith.constant 0 : index
    %c0_56 = arith.constant 0 : index
    %45 = vector.load %arg7[%c0_55, %c0_56] : memref<36x324xbf16, #tpu.memory_space<vmem>>, vector<36x324xbf16>
    %cst_57 = arith.constant dense<0.000000e+00> : vector<8x324xf32>
    %46 = tpu.matmul %44, %45, %cst_57 {dimension_numbers = #tpu.dot_dimension_numbers<[1], [0], [0], [1], [0, 0, 1, 1], [], []>} : vector<8x36xbf16>, vector<36x324xbf16>, vector<8x324xf32> -> vector<8x324xf32>
    %47 = vector.broadcast %0 : vector<1x324xf32> to vector<8x324xf32>
    %48 = arith.mulf %46, %47 : vector<8x324xf32>
    %cst_58 = arith.constant dense<0.000000e+00> : vector<8xf32>
    %49 = vector.multi_reduction <add>, %48, %cst_58 [1] : vector<8x324xf32> to vector<8xf32>
    %50 = vector.shape_cast %49 : vector<8xf32> to vector<8x1xf32>
    %c0_59 = arith.constant 0 : index
    %c0_60 = arith.constant 0 : index
    %c0_61 = arith.constant 0 : index
    %51 = vector.load %arg5[%c0_59, %c0_60, %c0_61] : memref<1x8x1xf32, #tpu.memory_space<vmem>>, vector<1x8x1xf32>
    %52 = vector.shape_cast %51 : vector<1x8x1xf32> to vector<8x1xf32>
    %53 = vector.shape_cast %50 : vector<8x1xf32> to vector<1x8x1xf32>
    tpu.vector_store %arg5[%c0_59, %c0_60, %c0_61], %53 {strides = array<i32>} : memref<1x8x1xf32, #tpu.memory_space<vmem>>, vector<1x8x1xf32>,
    %54 = arith.mulf %48, %46 : vector<8x324xf32>
    %cst_62 = arith.constant dense<0.000000e+00> : vector<8xf32>
    %55 = vector.multi_reduction <add>, %54, %cst_62 [1] : vector<8x324xf32> to vector<8xf32>
    %56 = vector.shape_cast %55 : vector<8xf32> to vector<8x1xf32>
    %c0_63 = arith.constant 0 : index
    %c0_64 = arith.constant 0 : index
    %c0_65 = arith.constant 0 : index
    %57 = vector.load %arg6[%c0_63, %c0_64, %c0_65] : memref<1x8x1xf32, #tpu.memory_space<vmem>>, vector<1x8x1xf32>
    %58 = vector.shape_cast %57 : vector<1x8x1xf32> to vector<8x1xf32>
    %59 = vector.shape_cast %56 : vector<8x1xf32> to vector<1x8x1xf32>
    tpu.vector_store %arg6[%c0_63, %c0_64, %c0_65], %59 {strides = array<i32>} : memref<1x8x1xf32, #tpu.memory_space<vmem>>, vector<1x8x1xf32>,
    %c0_66 = arith.constant 0 : index
    %c0_67 = arith.constant 0 : index
    %c0_68 = arith.constant 0 : index
    %60 = vector.load %arg4[%c0_66, %c0_67, %c0_68] : memref<1x8x324xf32, #tpu.memory_space<vmem>>, vector<1x8x324xf32>
    %61 = vector.shape_cast %60 : vector<1x8x324xf32> to vector<8x324xf32>
    %62 = vector.shape_cast %46 : vector<8x324xf32> to vector<1x8x324xf32>
    tpu.vector_store %arg4[%c0_66, %c0_67, %c0_68], %62 {strides = array<i32>} : memref<1x8x324xf32, #tpu.memory_space<vmem>>, vector<1x8x324xf32>,
    return
  }
  func.func @transform_0(%arg0: i32) -> (i32, i32, i32) {
    %c0_i32 = arith.constant 0 : i32
    %c0_i32_0 = arith.constant 0 : i32
    %c0_i32_1 = arith.constant 0 : i32
    return %arg0, %c0_i32, %c0_i32_0 : i32, i32, i32
  }
  func.func @transform_1(%arg0: i32) -> (i32, i32) {
    %c0_i32 = arith.constant 0 : i32
    %c0_i32_0 = arith.constant 0 : i32
    %c0_i32_1 = arith.constant 0 : i32
    return %c0_i32, %c0_i32_0 : i32, i32
  }
  func.func @transform_2(%arg0: i32) -> (i32, i32) {
    %c0_i32 = arith.constant 0 : i32
    %c0_i32_0 = arith.constant 0 : i32
    %c0_i32_1 = arith.constant 0 : i32
    return %c0_i32, %c0_i32_0 : i32, i32
  }
  func.func @transform_3(%arg0: i32) -> (i32, i32, i32) {
    %c0_i32 = arith.constant 0 : i32
    %c0_i32_0 = arith.constant 0 : i32
    %c0_i32_1 = arith.constant 0 : i32
    return %arg0, %c0_i32, %c0_i32_0 : i32, i32, i32
  }
  func.func @transform_4(%arg0: i32) -> (i32, i32, i32) {
    %c0_i32 = arith.constant 0 : i32
    %c0_i32_0 = arith.constant 0 : i32
    %c0_i32_1 = arith.constant 0 : i32
    return %arg0, %c0_i32, %c0_i32_0 : i32, i32, i32
  }
  func.func @transform_5(%arg0: i32) -> (i32, i32, i32) {
    %c0_i32 = arith.constant 0 : i32
    %c0_i32_0 = arith.constant 0 : i32
    %c0_i32_1 = arith.constant 0 : i32
    return %arg0, %c0_i32, %c0_i32_0 : i32, i32, i32
  }
}

module attributes {stable_mosaic.version = 11 : i64} {
  func.func @kernel(%arg0: i32, %arg1: memref<1x8x324xf32, #tpu.memory_space<vmem>>, %arg2: memref<8x1xf32, #tpu.memory_space<vmem>>, %arg3: memref<8x1xf32, #tpu.memory_space<vmem>>, %arg4: memref<1x4x324xbf16, #tpu.memory_space<vmem>>, %arg5: memref<8x4xbf16, #tpu.memory_space<vmem>>, %arg6: memref<8x1xf32, #tpu.memory_space<vmem>>, %arg7: memref<1x8x324xf32, #tpu.memory_space<vmem>>) attributes {dimension_semantics = [#tpu.dimension_semantics<parallel>], iteration_bounds = array<i64: 2>, scalar_prefetch = 0 : i64, scratch_operands = 0 : i64, tpu.core_type = #tpu.core_type<tc>, window_params = [{transform_indices = @transform_0, window_bounds = array<i64: 1, 8, 324>}, {pipeline_mode = #tpu.pipeline_mode<synchronous>, transform_indices = @transform_1, window_bounds = array<i64: 8, 1>}, {pipeline_mode = #tpu.pipeline_mode<synchronous>, transform_indices = @transform_2, window_bounds = array<i64: 8, 1>}, {transform_indices = @transform_3, window_bounds = array<i64: 1, 4, 324>}, {pipeline_mode = #tpu.pipeline_mode<synchronous>, transform_indices = @transform_4, window_bounds = array<i64: 8, 4>}, {pipeline_mode = #tpu.pipeline_mode<synchronous>, transform_indices = @transform_5, window_bounds = array<i64: 8, 1>}, {transform_indices = @transform_6, window_bounds = array<i64: 1, 8, 324>}]} {
    %c0 = arith.constant 0 : index
    %c0_0 = arith.constant 0 : index
    %0 = vector.load %arg5[%c0, %c0_0] : memref<8x4xbf16, #tpu.memory_space<vmem>>, vector<8x4xbf16>
    %c0_1 = arith.constant 0 : index
    %c0_2 = arith.constant 0 : index
    %c0_3 = arith.constant 0 : index
    %1 = vector.load %arg4[%c0_1, %c0_2, %c0_3] : memref<1x4x324xbf16, #tpu.memory_space<vmem>>, vector<1x4x324xbf16>
    %2 = vector.shape_cast %1 : vector<1x4x324xbf16> to vector<4x324xbf16>
    %cst = arith.constant dense<0.000000e+00> : vector<8x324xf32>
    %3 = tpu.matmul %0, %2, %cst {dimension_numbers = #tpu.dot_dimension_numbers<[1], [0], [0], [1], [0, 0, 1, 1], [], []>} : vector<8x4xbf16>, vector<4x324xbf16>, vector<8x324xf32> -> vector<8x324xf32>
    %c0_4 = arith.constant 0 : index
    %c0_5 = arith.constant 0 : index
    %4 = vector.load %arg6[%c0_4, %c0_5] : memref<8x1xf32, #tpu.memory_space<vmem>>, vector<8x1xf32>
    %5 = vector.broadcast %4 : vector<8x1xf32> to vector<8x324xf32>
    %6 = arith.addf %3, %5 : vector<8x324xf32>
    %c0_6 = arith.constant 0 : index
    %c0_7 = arith.constant 0 : index
    %c0_8 = arith.constant 0 : index
    %7 = vector.load %arg1[%c0_6, %c0_7, %c0_8] : memref<1x8x324xf32, #tpu.memory_space<vmem>>, vector<1x8x324xf32>
    %8 = vector.shape_cast %7 : vector<1x8x324xf32> to vector<8x324xf32>
    %c0_9 = arith.constant 0 : index
    %c0_10 = arith.constant 0 : index
    %9 = vector.load %arg2[%c0_9, %c0_10] : memref<8x1xf32, #tpu.memory_space<vmem>>, vector<8x1xf32>
    %10 = vector.broadcast %9 : vector<8x1xf32> to vector<8x324xf32>
    %11 = arith.mulf %8, %10 : vector<8x324xf32>
    %c0_11 = arith.constant 0 : index
    %c0_12 = arith.constant 0 : index
    %12 = vector.load %arg3[%c0_11, %c0_12] : memref<8x1xf32, #tpu.memory_space<vmem>>, vector<8x1xf32>
    %13 = vector.broadcast %12 : vector<8x1xf32> to vector<8x324xf32>
    %14 = arith.addf %11, %13 : vector<8x324xf32>
    %15 = arith.addf %14, %6 : vector<8x324xf32>
    %cst_13 = arith.constant 0.000000e+00 : f32
    %16 = vector.broadcast %cst_13 : f32 to vector<8x324xf32>
    %17 = arith.maximumf %15, %16 : vector<8x324xf32>
    %c0_14 = arith.constant 0 : index
    %c0_15 = arith.constant 0 : index
    %c0_16 = arith.constant 0 : index
    %18 = vector.load %arg7[%c0_14, %c0_15, %c0_16] : memref<1x8x324xf32, #tpu.memory_space<vmem>>, vector<1x8x324xf32>
    %19 = vector.shape_cast %18 : vector<1x8x324xf32> to vector<8x324xf32>
    %20 = vector.shape_cast %17 : vector<8x324xf32> to vector<1x8x324xf32>
    tpu.vector_store %arg7[%c0_14, %c0_15, %c0_16], %20 {strides = array<i32>} : memref<1x8x324xf32, #tpu.memory_space<vmem>>, vector<1x8x324xf32>,
    return
  }
  func.func @transform_0(%arg0: i32) -> (i32, i32, i32) {
    %c0_i32 = arith.constant 0 : i32
    %c0_i32_0 = arith.constant 0 : i32
    %c0_i32_1 = arith.constant 0 : i32
    return %arg0, %c0_i32, %c0_i32_0 : i32, i32, i32
  }
  func.func @transform_1(%arg0: i32) -> (i32, i32) {
    %c0_i32 = arith.constant 0 : i32
    %c0_i32_0 = arith.constant 0 : i32
    %c0_i32_1 = arith.constant 0 : i32
    return %c0_i32, %c0_i32_0 : i32, i32
  }
  func.func @transform_2(%arg0: i32) -> (i32, i32) {
    %c0_i32 = arith.constant 0 : i32
    %c0_i32_0 = arith.constant 0 : i32
    %c0_i32_1 = arith.constant 0 : i32
    return %c0_i32, %c0_i32_0 : i32, i32
  }
  func.func @transform_3(%arg0: i32) -> (i32, i32, i32) {
    %c0_i32 = arith.constant 0 : i32
    %c0_i32_0 = arith.constant 0 : i32
    %c0_i32_1 = arith.constant 0 : i32
    return %arg0, %c0_i32, %c0_i32_0 : i32, i32, i32
  }
  func.func @transform_4(%arg0: i32) -> (i32, i32) {
    %c0_i32 = arith.constant 0 : i32
    %c0_i32_0 = arith.constant 0 : i32
    %c0_i32_1 = arith.constant 0 : i32
    return %c0_i32, %c0_i32_0 : i32, i32
  }
  func.func @transform_5(%arg0: i32) -> (i32, i32) {
    %c0_i32 = arith.constant 0 : i32
    %c0_i32_0 = arith.constant 0 : i32
    %c0_i32_1 = arith.constant 0 : i32
    return %c0_i32, %c0_i32_0 : i32, i32
  }
  func.func @transform_6(%arg0: i32) -> (i32, i32, i32) {
    %c0_i32 = arith.constant 0 : i32
    %c0_i32_0 = arith.constant 0 : i32
    %c0_i32_1 = arith.constant 0 : i32
    return %arg0, %c0_i32, %c0_i32_0 : i32, i32, i32
  }
}

module attributes {stable_mosaic.version = 11 : i64} {
  func.func @kernel(%arg0: i32, %arg1: memref<1x8x324xf32, #tpu.memory_space<vmem>>, %arg2: memref<8x1xf32, #tpu.memory_space<vmem>>, %arg3: memref<8x1xf32, #tpu.memory_space<vmem>>, %arg4: memref<1x324xf32, #tpu.memory_space<vmem>>, %arg5: memref<8x72xbf16, #tpu.memory_space<vmem>>, %arg6: memref<1x8x324xf32, #tpu.memory_space<vmem>>, %arg7: memref<1x8x1xf32, #tpu.memory_space<vmem>>, %arg8: memref<1x8x1xf32, #tpu.memory_space<vmem>>, %arg9: memref<72x324xbf16, #tpu.memory_space<vmem>>) attributes {dimension_semantics = [#tpu.dimension_semantics<parallel>], iteration_bounds = array<i64: 2>, scalar_prefetch = 0 : i64, scratch_operands = 1 : i64, tpu.core_type = #tpu.core_type<tc>, window_params = [{transform_indices = @transform_0, window_bounds = array<i64: 1, 8, 324>}, {pipeline_mode = #tpu.pipeline_mode<synchronous>, transform_indices = @transform_1, window_bounds = array<i64: 8, 1>}, {pipeline_mode = #tpu.pipeline_mode<synchronous>, transform_indices = @transform_2, window_bounds = array<i64: 8, 1>}, {pipeline_mode = #tpu.pipeline_mode<synchronous>, transform_indices = @transform_3, window_bounds = array<i64: 1, 324>}, {pipeline_mode = #tpu.pipeline_mode<synchronous>, transform_indices = @transform_4, window_bounds = array<i64: 8, 72>}, {transform_indices = @transform_5, window_bounds = array<i64: 1, 8, 324>}, {transform_indices = @transform_6, window_bounds = array<i64: 1, 8, 1>}, {transform_indices = @transform_7, window_bounds = array<i64: 1, 8, 1>}]} {
    %c0 = arith.constant 0 : index
    %c0_0 = arith.constant 0 : index
    %0 = vector.load %arg4[%c0, %c0_0] : memref<1x324xf32, #tpu.memory_space<vmem>>, vector<1x324xf32>
    %c0_1 = arith.constant 0 : index
    %c0_2 = arith.constant 0 : index
    %c0_3 = arith.constant 0 : index
    %1 = vector.load %arg1[%c0_1, %c0_2, %c0_3] : memref<1x8x324xf32, #tpu.memory_space<vmem>>, vector<1x8x324xf32>
    %2 = vector.shape_cast %1 : vector<1x8x324xf32> to vector<8x324xf32>
    %c0_4 = arith.constant 0 : index
    %c0_5 = arith.constant 0 : index
    %3 = vector.load %arg2[%c0_4, %c0_5] : memref<8x1xf32, #tpu.memory_space<vmem>>, vector<8x1xf32>
    %4 = vector.broadcast %3 : vector<8x1xf32> to vector<8x324xf32>
    %5 = arith.mulf %2, %4 : vector<8x324xf32>
    %c0_6 = arith.constant 0 : index
    %c0_7 = arith.constant 0 : index
    %6 = vector.load %arg3[%c0_6, %c0_7] : memref<8x1xf32, #tpu.memory_space<vmem>>, vector<8x1xf32>
    %7 = vector.broadcast %6 : vector<8x1xf32> to vector<8x324xf32>
    %8 = arith.addf %5, %7 : vector<8x324xf32>
    %cst = arith.constant 0.000000e+00 : f32
    %9 = vector.broadcast %cst : f32 to vector<8x324xf32>
    %10 = arith.maximumf %8, %9 : vector<8x324xf32>
    %11 = vector.broadcast %0 : vector<1x324xf32> to vector<8x324xf32>
    %12 = arith.mulf %10, %11 : vector<8x324xf32>
    %13 = arith.truncf %12 : vector<8x324xf32> to vector<8x324xbf16>
    %cst_8 = arith.constant 0.000000e+00 : bf16
    %14 = vector.broadcast %cst_8 : bf16 to vector<8x19xbf16>
    %c0_9 = arith.constant 0 : index
    %c0_10 = arith.constant 0 : index
    %15 = vector.load %arg9[%c0_9, %c0_10] : memref<72x324xbf16, #tpu.memory_space<vmem>>, vector<8x19xbf16>
    tpu.vector_store %arg9[%c0_9, %c0_10], %14 {strides = array<i32>} : memref<72x324xbf16, #tpu.memory_space<vmem>>, vector<8x19xbf16>,
    %16 = vector.extract_strided_slice %13 {offsets = [0, 0], sizes = [8, 305], strides = [1, 1]} : vector<8x324xbf16> to vector<8x305xbf16>
    %c0_11 = arith.constant 0 : index
    %c19 = arith.constant 19 : index
    %17 = vector.load %arg9[%c0_11, %c19] : memref<72x324xbf16, #tpu.memory_space<vmem>>, vector<8x305xbf16>
    tpu.vector_store %arg9[%c0_11, %c19], %16 {strides = array<i32>} : memref<72x324xbf16, #tpu.memory_space<vmem>>, vector<8x305xbf16>,
    %cst_12 = arith.constant 0.000000e+00 : bf16
    %18 = vector.broadcast %cst_12 : bf16 to vector<8x18xbf16>
    %c8 = arith.constant 8 : index
    %c0_13 = arith.constant 0 : index
    %19 = vector.load %arg9[%c8, %c0_13] : memref<72x324xbf16, #tpu.memory_space<vmem>>, vector<8x18xbf16>
    tpu.vector_store %arg9[%c8, %c0_13], %18 {strides = array<i32>} : memref<72x324xbf16, #tpu.memory_space<vmem>>, vector<8x18xbf16>,
    %20 = vector.extract_strided_slice %13 {offsets = [0, 0], sizes = [8, 306], strides = [1, 1]} : vector<8x324xbf16> to vector<8x306xbf16>
    %c8_14 = arith.constant 8 : index
    %c18 = arith.constant 18 : index
    %21 = vector.load %arg9[%c8_14, %c18] : memref<72x324xbf16, #tpu.memory_space<vmem>>, vector<8x306xbf16>
    tpu.vector_store %arg9[%c8_14, %c18], %20 {strides = array<i32>} : memref<72x324xbf16, #tpu.memory_space<vmem>>, vector<8x306xbf16>,
    %cst_15 = arith.constant 0.000000e+00 : bf16
    %22 = vector.broadcast %cst_15 : bf16 to vector<8x17xbf16>
    %c16 = arith.constant 16 : index
    %c0_16 = arith.constant 0 : index
    %23 = vector.load %arg9[%c16, %c0_16] : memref<72x324xbf16, #tpu.memory_space<vmem>>, vector<8x17xbf16>
    tpu.vector_store %arg9[%c16, %c0_16], %22 {strides = array<i32>} : memref<72x324xbf16, #tpu.memory_space<vmem>>, vector<8x17xbf16>,
    %24 = vector.extract_strided_slice %13 {offsets = [0, 0], sizes = [8, 307], strides = [1, 1]} : vector<8x324xbf16> to vector<8x307xbf16>
    %c16_17 = arith.constant 16 : index
    %c17 = arith.constant 17 : index
    %25 = vector.load %arg9[%c16_17, %c17] : memref<72x324xbf16, #tpu.memory_space<vmem>>, vector<8x307xbf16>
    tpu.vector_store %arg9[%c16_17, %c17], %24 {strides = array<i32>} : memref<72x324xbf16, #tpu.memory_space<vmem>>, vector<8x307xbf16>,
    %cst_18 = arith.constant 0.000000e+00 : bf16
    %26 = vector.broadcast %cst_18 : bf16 to vector<8x1xbf16>
    %c24 = arith.constant 24 : index
    %c0_19 = arith.constant 0 : index
    %27 = vector.load %arg9[%c24, %c0_19] : memref<72x324xbf16, #tpu.memory_space<vmem>>, vector<8x1xbf16>
    tpu.vector_store %arg9[%c24, %c0_19], %26 {strides = array<i32>} : memref<72x324xbf16, #tpu.memory_space<vmem>>, vector<8x1xbf16>,
    %28 = vector.extract_strided_slice %13 {offsets = [0, 0], sizes = [8, 323], strides = [1, 1]} : vector<8x324xbf16> to vector<8x323xbf16>
    %c24_20 = arith.constant 24 : index
    %c1 = arith.constant 1 : index
    %29 = vector.load %arg9[%c24_20, %c1] : memref<72x324xbf16, #tpu.memory_space<vmem>>, vector<8x323xbf16>
    tpu.vector_store %arg9[%c24_20, %c1], %28 {strides = array<i32>} : memref<72x324xbf16, #tpu.memory_space<vmem>>, vector<8x323xbf16>,
    %c32 = arith.constant 32 : index
    %c0_21 = arith.constant 0 : index
    %30 = vector.load %arg9[%c32, %c0_21] : memref<72x324xbf16, #tpu.memory_space<vmem>>, vector<8x324xbf16>
    tpu.vector_store %arg9[%c32, %c0_21], %13 {strides = array<i32>} : memref<72x324xbf16, #tpu.memory_space<vmem>>, vector<8x324xbf16>,
    %cst_22 = arith.constant 0.000000e+00 : bf16
    %31 = vector.broadcast %cst_22 : bf16 to vector<8x1xbf16>
    %c40 = arith.constant 40 : index
    %c323 = arith.constant 323 : index
    %32 = vector.load %arg9[%c40, %c323] : memref<72x324xbf16, #tpu.memory_space<vmem>>, vector<8x1xbf16>
    tpu.vector_store %arg9[%c40, %c323], %31 {strides = array<i32>} : memref<72x324xbf16, #tpu.memory_space<vmem>>, vector<8x1xbf16>,
    %33 = vector.extract_strided_slice %13 {offsets = [0, 1], sizes = [8, 323], strides = [1, 1]} : vector<8x324xbf16> to vector<8x323xbf16>
    %c40_23 = arith.constant 40 : index
    %c0_24 = arith.constant 0 : index
    %34 = vector.load %arg9[%c40_23, %c0_24] : memref<72x324xbf16, #tpu.memory_space<vmem>>, vector<8x323xbf16>
    tpu.vector_store %arg9[%c40_23, %c0_24], %33 {strides = array<i32>} : memref<72x324xbf16, #tpu.memory_space<vmem>>, vector<8x323xbf16>,
    %cst_25 = arith.constant 0.000000e+00 : bf16
    %35 = vector.broadcast %cst_25 : bf16 to vector<8x17xbf16>
    %c48 = arith.constant 48 : index
    %c307 = arith.constant 307 : index
    %36 = vector.load %arg9[%c48, %c307] : memref<72x324xbf16, #tpu.memory_space<vmem>>, vector<8x17xbf16>
    tpu.vector_store %arg9[%c48, %c307], %35 {strides = array<i32>} : memref<72x324xbf16, #tpu.memory_space<vmem>>, vector<8x17xbf16>,
    %37 = vector.extract_strided_slice %13 {offsets = [0, 17], sizes = [8, 307], strides = [1, 1]} : vector<8x324xbf16> to vector<8x307xbf16>
    %c48_26 = arith.constant 48 : index
    %c0_27 = arith.constant 0 : index
    %38 = vector.load %arg9[%c48_26, %c0_27] : memref<72x324xbf16, #tpu.memory_space<vmem>>, vector<8x307xbf16>
    tpu.vector_store %arg9[%c48_26, %c0_27], %37 {strides = array<i32>} : memref<72x324xbf16, #tpu.memory_space<vmem>>, vector<8x307xbf16>,
    %cst_28 = arith.constant 0.000000e+00 : bf16
    %39 = vector.broadcast %cst_28 : bf16 to vector<8x18xbf16>
    %c56 = arith.constant 56 : index
    %c306 = arith.constant 306 : index
    %40 = vector.load %arg9[%c56, %c306] : memref<72x324xbf16, #tpu.memory_space<vmem>>, vector<8x18xbf16>
    tpu.vector_store %arg9[%c56, %c306], %39 {strides = array<i32>} : memref<72x324xbf16, #tpu.memory_space<vmem>>, vector<8x18xbf16>,
    %41 = vector.extract_strided_slice %13 {offsets = [0, 18], sizes = [8, 306], strides = [1, 1]} : vector<8x324xbf16> to vector<8x306xbf16>
    %c56_29 = arith.constant 56 : index
    %c0_30 = arith.constant 0 : index
    %42 = vector.load %arg9[%c56_29, %c0_30] : memref<72x324xbf16, #tpu.memory_space<vmem>>, vector<8x306xbf16>
    tpu.vector_store %arg9[%c56_29, %c0_30], %41 {strides = array<i32>} : memref<72x324xbf16, #tpu.memory_space<vmem>>, vector<8x306xbf16>,
    %cst_31 = arith.constant 0.000000e+00 : bf16
    %43 = vector.broadcast %cst_31 : bf16 to vector<8x19xbf16>
    %c64 = arith.constant 64 : index
    %c305 = arith.constant 305 : index
    %44 = vector.load %arg9[%c64, %c305] : memref<72x324xbf16, #tpu.memory_space<vmem>>, vector<8x19xbf16>
    tpu.vector_store %arg9[%c64, %c305], %43 {strides = array<i32>} : memref<72x324xbf16, #tpu.memory_space<vmem>>, vector<8x19xbf16>,
    %45 = vector.extract_strided_slice %13 {offsets = [0, 19], sizes = [8, 305], strides = [1, 1]} : vector<8x324xbf16> to vector<8x305xbf16>
    %c64_32 = arith.constant 64 : index
    %c0_33 = arith.constant 0 : index
    %46 = vector.load %arg9[%c64_32, %c0_33] : memref<72x324xbf16, #tpu.memory_space<vmem>>, vector<8x305xbf16>
    tpu.vector_store %arg9[%c64_32, %c0_33], %45 {strides = array<i32>} : memref<72x324xbf16, #tpu.memory_space<vmem>>, vector<8x305xbf16>,
    %c0_34 = arith.constant 0 : index
    %c0_35 = arith.constant 0 : index
    %47 = vector.load %arg5[%c0_34, %c0_35] : memref<8x72xbf16, #tpu.memory_space<vmem>>, vector<8x72xbf16>
    %c0_36 = arith.constant 0 : index
    %c0_37 = arith.constant 0 : index
    %48 = vector.load %arg9[%c0_36, %c0_37] : memref<72x324xbf16, #tpu.memory_space<vmem>>, vector<72x324xbf16>
    %cst_38 = arith.constant dense<0.000000e+00> : vector<8x324xf32>
    %49 = tpu.matmul %47, %48, %cst_38 {dimension_numbers = #tpu.dot_dimension_numbers<[1], [0], [0], [1], [0, 0, 1, 1], [], []>} : vector<8x72xbf16>, vector<72x324xbf16>, vector<8x324xf32> -> vector<8x324xf32>
    %50 = vector.broadcast %0 : vector<1x324xf32> to vector<8x324xf32>
    %51 = arith.mulf %49, %50 : vector<8x324xf32>
    %cst_39 = arith.constant dense<0.000000e+00> : vector<8xf32>
    %52 = vector.multi_reduction <add>, %51, %cst_39 [1] : vector<8x324xf32> to vector<8xf32>
    %53 = vector.shape_cast %52 : vector<8xf32> to vector<8x1xf32>
    %c0_40 = arith.constant 0 : index
    %c0_41 = arith.constant 0 : index
    %c0_42 = arith.constant 0 : index
    %54 = vector.load %arg7[%c0_40, %c0_41, %c0_42] : memref<1x8x1xf32, #tpu.memory_space<vmem>>, vector<1x8x1xf32>
    %55 = vector.shape_cast %54 : vector<1x8x1xf32> to vector<8x1xf32>
    %56 = vector.shape_cast %53 : vector<8x1xf32> to vector<1x8x1xf32>
    tpu.vector_store %arg7[%c0_40, %c0_41, %c0_42], %56 {strides = array<i32>} : memref<1x8x1xf32, #tpu.memory_space<vmem>>, vector<1x8x1xf32>,
    %57 = arith.mulf %51, %49 : vector<8x324xf32>
    %cst_43 = arith.constant dense<0.000000e+00> : vector<8xf32>
    %58 = vector.multi_reduction <add>, %57, %cst_43 [1] : vector<8x324xf32> to vector<8xf32>
    %59 = vector.shape_cast %58 : vector<8xf32> to vector<8x1xf32>
    %c0_44 = arith.constant 0 : index
    %c0_45 = arith.constant 0 : index
    %c0_46 = arith.constant 0 : index
    %60 = vector.load %arg8[%c0_44, %c0_45, %c0_46] : memref<1x8x1xf32, #tpu.memory_space<vmem>>, vector<1x8x1xf32>
    %61 = vector.shape_cast %60 : vector<1x8x1xf32> to vector<8x1xf32>
    %62 = vector.shape_cast %59 : vector<8x1xf32> to vector<1x8x1xf32>
    tpu.vector_store %arg8[%c0_44, %c0_45, %c0_46], %62 {strides = array<i32>} : memref<1x8x1xf32, #tpu.memory_space<vmem>>, vector<1x8x1xf32>,
    %c0_47 = arith.constant 0 : index
    %c0_48 = arith.constant 0 : index
    %c0_49 = arith.constant 0 : index
    %63 = vector.load %arg6[%c0_47, %c0_48, %c0_49] : memref<1x8x324xf32, #tpu.memory_space<vmem>>, vector<1x8x324xf32>
    %64 = vector.shape_cast %63 : vector<1x8x324xf32> to vector<8x324xf32>
    %65 = vector.shape_cast %49 : vector<8x324xf32> to vector<1x8x324xf32>
    tpu.vector_store %arg6[%c0_47, %c0_48, %c0_49], %65 {strides = array<i32>} : memref<1x8x324xf32, #tpu.memory_space<vmem>>, vector<1x8x324xf32>,
    return
  }
  func.func @transform_0(%arg0: i32) -> (i32, i32, i32) {
    %c0_i32 = arith.constant 0 : i32
    %c0_i32_0 = arith.constant 0 : i32
    %c0_i32_1 = arith.constant 0 : i32
    return %arg0, %c0_i32, %c0_i32_0 : i32, i32, i32
  }
  func.func @transform_1(%arg0: i32) -> (i32, i32) {
    %c0_i32 = arith.constant 0 : i32
    %c0_i32_0 = arith.constant 0 : i32
    %c0_i32_1 = arith.constant 0 : i32
    return %c0_i32, %c0_i32_0 : i32, i32
  }
  func.func @transform_2(%arg0: i32) -> (i32, i32) {
    %c0_i32 = arith.constant 0 : i32
    %c0_i32_0 = arith.constant 0 : i32
    %c0_i32_1 = arith.constant 0 : i32
    return %c0_i32, %c0_i32_0 : i32, i32
  }
  func.func @transform_3(%arg0: i32) -> (i32, i32) {
    %c0_i32 = arith.constant 0 : i32
    %c0_i32_0 = arith.constant 0 : i32
    %c0_i32_1 = arith.constant 0 : i32
    return %c0_i32, %c0_i32_0 : i32, i32
  }
  func.func @transform_4(%arg0: i32) -> (i32, i32) {
    %c0_i32 = arith.constant 0 : i32
    %c0_i32_0 = arith.constant 0 : i32
    %c0_i32_1 = arith.constant 0 : i32
    return %c0_i32, %c0_i32_0 : i32, i32
  }
  func.func @transform_5(%arg0: i32) -> (i32, i32, i32) {
    %c0_i32 = arith.constant 0 : i32
    %c0_i32_0 = arith.constant 0 : i32
    %c0_i32_1 = arith.constant 0 : i32
    return %arg0, %c0_i32, %c0_i32_0 : i32, i32, i32
  }
  func.func @transform_6(%arg0: i32) -> (i32, i32, i32) {
    %c0_i32 = arith.constant 0 : i32
    %c0_i32_0 = arith.constant 0 : i32
    %c0_i32_1 = arith.constant 0 : i32
    return %arg0, %c0_i32, %c0_i32_0 : i32, i32, i32
  }
  func.func @transform_7(%arg0: i32) -> (i32, i32, i32) {
    %c0_i32 = arith.constant 0 : i32
    %c0_i32_0 = arith.constant 0 : i32
    %c0_i32_1 = arith.constant 0 : i32
    return %arg0, %c0_i32, %c0_i32_0 : i32, i32, i32
  }
}

</mosaic_0001>

<bundles_post_ra>
// kernel: resnet_block_forward.5
= control target key start
LH: loop header
LB: loop body
LE: loop exit
PB: predicated region body
PF: predicated region fallthrough
CT: control target
= control target key end

     0   :  { %s576_s21 = smov 0   ;;  %s612_s0 = inlined_call_operand.vmem [shape: f32[2,8,324], index: 0, kind: input, shape index: {}]   ;;  %s613_s1 = inlined_call_operand.vmem [shape: f32[8,1], index: 1, kind: input, shape index: {}]   ;;  %s614_s2 = inlined_call_operand.vmem [shape: f32[8,1], index: 2, kind: input, shape index: {}]   ;;  %s615_s3 = inlined_call_operand.vmem [shape: bf16[2,4,324], index: 3, kind: input, shape index: {}]   ;;  %s616_s4 = inlined_call_operand.vmem [shape: bf16[8,4], index: 4, kind: input, shape index: {}]   ;;  %s617_s5 = inlined_call_operand.vmem [shape: f32[8,1], index: 5, kind: input, shape index: {}]   ;;  %s618_s6 = inlined_call_operand.vmem [shape: f32[2,8,324], index: 6, kind: output, shape index: {}]  }
   0x1 LB: > { %s491_s22 = sadd.s32 4294967295, %s535_s21   ;;  %p495_p0 = scmp.ge.s32.totalorder %s535_s21, 1  ;;  %s535_s21 = sphi %s576_s21, %s16_s21  }
   0x2   : > { %p222_p1 = scmp.lt.s32.totalorder %s535_s21, 3 }
   0x4   : > { %p223_p2 = pnand %p495_p0, %p222_p1 }
   0x5   : > { %p257_p3 = scmp.lt.s32.totalorder (!%p223_p2), %s491_s22, 1 }
   0x6   : > { %226 = sbr.rel (%p223_p2) target bundleno = 228 (0xe4), region = 44 }
   0xb   : > { %v286_v0 = vlaneseq  ;;  %v537_v1 = vmov 1983009808   ;;  %v538_v3 = vmov 0.0   ;;  %v396_v4 = vld [vmem:[%s613_s1] sm:$0xff]  ;;  %s620_s22 = smov (!%p257_p3, %s491_s22), 1  ;;  %v539_v6 = vmov 0  }
   0xc   : > { %v284_v2 = vunpack.c.l.s4 %v537_v1  ;;  %506 = vmatprep.subr.bf16.mxu1 %v538_v3  ;;  %344 = vmatprep.mubr.bf16.mxu0 %v539_v6  ;;  %vm540_vm0 = vmmov 0   ;;  %v405_v7 = vld [vmem:[%s614_s2] sm:$0xff]  ;;  %s513_s27 = smul.u32 6, %s620_s22  ;;  %vm302_vm1 = vcmask 1041408   ;;  %vm298_vm2 = vcmask 31744  }
   0xd   : > { %v287_v5 = vshrl.u32 %v286_v0, 7  ;;  %508 = vmatprep.mubr.msk.bf16.mxu1 %vm540_vm0, %v538_v3  ;;  %526 = vset.pattern.permute.xlu0 %v539_v6  ;;  %v275_v10 = vld [vmem:[%s617_s5] sm:$0xff]  ;;  %s512_s11 = smul.u32 24, %s620_s22  ;;  %vm422_vm3 = vcmask 556032  }
   0xe   : > { %v285_v8 = vunpack.c.0.s8 %v284_v2  ;;  %527 = vset.pattern.permute.xlu1 %v539_v6  ;;  %399 = vperm.xlu0 %526, %v396_v4   ;;  %s266_s8 = scalar_lea.vmem %s615_s3, %s513_s27  ;;  %v273_v18 = vld [vmem:[%s616_s4] sm:$0xf] }
   0xf   : > { %408 = vperm.xlu1 %527, %v405_v7   ;;  %v274_v11 = vld [vmem:[%s266_s8] sm:$0x3f]  ;;  %s261_s14 = scalar_lea.vmem %s612_s0, %s512_s11  ;;  %s271_s17 = scalar_lea.vmem %s618_s6, %s512_s11 }
  0x10   : > { %v288_v9 = vsub.s32 %v285_v8, %v287_v5  ;;  %v282_v13 = vcombine.high %v274_v11, %v274_v11  ;;  %v393_v19 = vld [vmem:[%s261_s14] sm:$0xff]  ;;  %v395_v20 = vld [vmem:[%s261_s14 + $0x10] sm:$0xff]  ;;  %v394_v24 = vld [vmem:[%s261_s14 + $0x8] sm:$0xff] }
  0x12   : > { %v289_v12 = vrot.slane %v274_v11, %v288_v9  ;;  %278 = vperm.xlu0 %526, %v275_v10   ;;  %v296_v16 = vrot.slane %v282_v13, %v288_v9 }
  0x14   : > { %v297_v14 = vcombine.high %v289_v12, %v289_v12  ;;  %v304_v15 = vsel %vm302_vm1, %v289_v12, 0  ;;  %v310_v17 = vsel %vm302_vm1, %v296_v16, 0 }
  0x15   : > { %507 = vmatpush3.bf16.msra.mxu1 %v310_v17 }
  0x16   : > { %499 = vmatprep.subr.msk.bf16.mxu0 %vm302_vm1, %v297_v14 }
  0x17   : > { %327 = vmatpush1.bf16.msra.mxu0 %v304_v15 }
  0x18   : > { %509 = vmatmul.mubr.msk.bf16.vlgmr.msra.gmra.mxu1 %vm298_vm2, %v273_v18 }
  0x1a   : > { %500 = vmatmul.mubr.msk.bf16.vlgmr.msra.gmra.mxu0 %vm298_vm2, %v273_v18 }
  0x89   : > { %v400_v21 = vpop.permute.xlu0 %399 }
  0x8a   : > { %v402_v22 = vmul.f32 %v400_v21, %v393_v19  ;;  %v404_v23 = vmul.f32 %v400_v21, %v395_v20  ;;  %v409_v25 = vpop.permute.xlu1 %408  ;;  %v403_v26 = vmul.f32 %v400_v21, %v394_v24 }
  0x8c   : > { %v411_v28 = vadd.f32 %v409_v25, %v402_v22  ;;  %v413_v29 = vadd.f32 %v409_v25, %v404_v23  ;;  %v412_v36 = vadd.f32 %v409_v25, %v403_v26 }
  0x8d   : > { %v279_v27 = vpop.permute.xlu0 %278 }
  0xd8   : > { %v387_v31 = vpop.f32.mrf.mxu1 }
  0xd9   : > { %v388_v33 = vadd.f32 %v387_v31, %v279_v27 }
  0xda   : > { %v346_v30 = vpop.f32.mrf.mxu0  ;;  %v510_v35 = vpop.f32.mrf.mxu1 }
  0xdb   : > { %v347_v32 = vadd.f32 %v346_v30, %v279_v27  ;;  %v416_v38 = vadd.f32 %v413_v29, %v388_v33 }
  0xdc   : > { %v348_v34 = vpop.f32.mrf.mxu0  ;;  %v390_v41 = vpop.f32.mrf.mxu1 }
  0xdd   : > { %v414_v37 = vadd.f32 %v411_v28, %v347_v32  ;;  %v349_v39 = vadd.f32 %v348_v34, %v279_v27  ;;  %v419_v43 = vmax.f32 %v416_v38, 0.0 }
  0xde   : > { %v350_v40 = vpop.f32.mrf.mxu0  ;;  %v511_v46 = vpop.f32.mrf.mxu1 }
  0xdf   : > { %v417_v42 = vmax.f32 %v414_v37, 0.0  ;;  %v415_v44 = vadd.f32 %v412_v36, %v349_v39  ;;  %423 = vst.msk [vmem:[%s271_s17 + $0x10] sm:$0xff] %vm422_vm3, %v419_v43 }
  0xe0   : > { %v351_v45 = vpop.f32.mrf.mxu0 }
  0xe1   : > { %420 = vst [vmem:[%s271_s17] sm:$0xff] %v417_v42  ;;  %v418_v47 = vmax.f32 %v415_v44, 0.0 }
  0xe3   : > { %421 = vst [vmem:[%s271_s17 + $0x8] sm:$0xff] %v418_v47 }
  0xe4 PF: > { %s16_s21 = sadd.s32 1, %s535_s21  }
  0xe5   : > { %p13_p4 = scmp.ge.s32.totalorder %s16_s21, 4  }
  0xe7   :  { %15 = sbr.rel (!%p13_p4) target bundleno = 1 (0x1), region = 77 }

// kernel: resnet_block_forward.3
= control target key start
LH: loop header
LB: loop body
LE: loop exit
PB: predicated region body
PF: predicated region fallthrough
CT: control target
= control target key end

     0   :  { %s970_s18 = smov 0   ;;  %s1090_s0 = inlined_call_operand.vmem [shape: bf16[2,4,324], index: 0, kind: input, shape index: {}]   ;;  %s1091_s1 = inlined_call_operand.vmem [shape: f32[1,324], index: 1, kind: input, shape index: {}]   ;;  %s1092_s2 = inlined_call_operand.vmem [shape: bf16[8,36], index: 2, kind: input, shape index: {}]   ;;  %s1093_s3 = inlined_call_operand.vmem [shape: f32[2,8,324], index: 3, kind: output, shape index: {0}]   ;;  %s1094_s4 = inlined_call_operand.vmem [shape: f32[2,8,1], index: 4, kind: output, shape index: {1}]   ;;  %s1095_s5 = inlined_call_operand.vmem [shape: f32[2,8,1], index: 5, kind: output, shape index: {2}]  }
   0x1 LB: > { %s840_s19 = sadd.s32 4294967295, %s926_s18   ;;  %p844_p0 = scmp.ge.s32.totalorder %s926_s18, 1  ;;  %s926_s18 = sphi %s970_s18, %s16_s18  }
   0x2   : > { %p192_p1 = scmp.lt.s32.totalorder %s926_s18, 3 }
   0x4   : > { %p193_p2 = pnand %p844_p0, %p192_p1 }
   0x5   : > { %p228_p3 = scmp.lt.s32.totalorder (!%p193_p2), %s840_s19, 1  ;;  %s930_s24 = smov (!%p193_p2), 109  }
   0x6   : > { %196 = sbr.rel (%p193_p2) target bundleno = 515 (0x203), region = 32  ;;  %s931_s25 = smov (!%p193_p2), 127  }
   0x7   : > { %s932_s26 = smov (!%p193_p2), 111   ;;  %s933_s27 = smov (!%p193_p2), 110  }
   0x8   : > { %s935_s28 = smov (!%p193_p2), 18   ;;  %s936_s29 = smov (!%p193_p2), 19  }
   0x9   : > { %s937_s30 = smov (!%p193_p2), 1   ;;  %s938_s6 = smov (!%p193_p2), 17  }
   0xb   : > { %v256_v0 = vlaneseq  ;;  %vm405_vm0 = vcmask 552474   ;;  %v928_v1 = vmov 1983009808   ;;  %v929_v3 = vmov 0   ;;  %s1101_s19 = smov (!%p228_p3, %s840_s19), 1 }
   0xc   : > { %v254_v2 = vunpack.c.l.s4 %v928_v1  ;;  %406 = vst.msk [vmem:[#allocation2 + $0x20] sm:$0xc] %vm405_vm0, %v929_v3  ;;  %vm472_vm1 = vcmask 552338   ;;  %635 = vmatprep.mubr.bf16.mxu0 %v929_v3  ;;  %vm505_vm2 = vcmask 550280   ;;  %s878_s20 = smul.u32 6, %s1101_s19  ;;  %vm439_vm3 = vcmask 550296  }
   0xd   : > { %v980_v4 = vshrl.u32 %v256_v0, 7  ;;  %473 = vst.msk [vmem:[#allocation2 + $0x2c] sm:$0xc] %vm472_vm1, %v929_v3  ;;  %vm283_vm4 = vcmask 142338   ;;  %vm248_vm5 = vcmask 148480   ;;  %vm351_vm6 = vcmask 3074  }
   0xe   : > { %v255_v5 = vunpack.c.0.s8 %v254_v2  ;;  %506 = vst.msk [vmem:[#allocation2 + $0x38] sm:$0x3] %vm505_vm2, %v929_v3  ;;  %s989_s23 = scalar_lea.vmem %s1090_s0, %s878_s20  ;;  %vm318_vm7 = vcmask 132096   ;;  %v934_v28 = vmov 0.0   ;;  %vm281_vm8 = vcmask 549888   ;;  %s879_s9 = smul.u32 24, %s1101_s19 }
   0xf   : > { %v507_v7 = vld [vmem:[%s989_s23] sm:$0x3f]  ;;  %440 = vst.msk [vmem:[#allocation2 + $0x2c] sm:$0x3] %vm439_vm3, %v929_v3  ;;  %868 = vmatprep.subr.bf16.mxu1 %v934_v28  ;;  %vm939_vm9 = vmmov 0   ;;  %vm437_vm10 = vcmask 543746  }
  0x10   : > { %v984_v6 = vsub.s32 %v255_v5, %v980_v4  ;;  %v407_v8 = vld [vmem:[%s989_s23] sm:$0x3f]  ;;  %v509_v13 = vcombine.high %v507_v7, %v507_v7  ;;  %284 = vst.msk [vmem:[#allocation2] sm:$0xc] %vm283_vm4, %v929_v3  ;;  %874 = vmatprep.mubr.msk.bf16.mxu1 %vm939_vm9, %v934_v28  ;;  %vm503_vm11 = vcmask 404482   ;;  %vm536_vm12 = vcmask 394240   ;;  %s237_s14 = scalar_lea.vmem %s1093_s3, %s879_s9 }
  0x11   : > { %v441_v9 = vld [vmem:[%s989_s23] sm:$0x3f]  ;;  %v409_v15 = vcombine.low %v407_v8, %v407_v8  ;;  %249 = vst.msk [vmem:[#allocation2] sm:$0x3] %vm248_vm5, %v929_v3  ;;  %vm430_vm13 = vcmask 1043456   ;;  %vm531_vm14 = vcmask 891904  }
  0x12   : > { %v516_v10 = vrot.slane %v507_v7, %v984_v6  ;;  %v423_v11 = vrot.slane %v407_v8, %v984_v6  ;;  %v474_v12 = vld [vmem:[%s989_s23] sm:$0x3f]  ;;  %v450_v16 = vrot.slane %v441_v9, %v984_v6  ;;  %v523_v19 = vrot.slane %v509_v13, %v984_v6  ;;  %352 = vst.msk [vmem:[#allocation2 + $0xc] sm:$0xc] %vm351_vm6, %v929_v3  ;;  %s847_s15 = sshll.u32 %s1101_s19, 3 }
  0x13   : > { %v384_v14 = vld [vmem:[%s989_s23] sm:$0x3f]  ;;  %v490_v17 = vrot.slane %v474_v12, %v984_v6  ;;  %v476_v18 = vcombine.low %v474_v12, %v474_v12  ;;  %v416_v20 = vrot.slane %v409_v15, %v984_v6  ;;  %v443_v21 = vcombine.high %v441_v9, %v441_v9  ;;  %319 = vst.msk [vmem:[#allocation2 + $0xc] sm:$0x3] %vm318_vm7, %v929_v3  ;;  %s241_s20 = scalar_lea.vmem %s1094_s4, %s847_s15 }
  0x14   : > { %524 = vrot.lane.b32.xlu0 %v516_v10, %s930_s24  ;;  %426 = vrot.lane.b32.xlu1 %v423_v11, %s931_s25  ;;  %849 = vst.sshfl [vmem:[#allocation2 + $0x18] sm:$0xf pattern:$0x76325410] %v384_v14  ;;  %v285_v22 = vld [vmem:[%s989_s23] sm:$0x3f]  ;;  %v386_v29 = vcombine.high %v384_v14, %v384_v14 }
  0x15   : > { %v483_v23 = vrot.slane %v476_v18, %v984_v6  ;;  %v457_v24 = vrot.slane %v443_v21, %v984_v6  ;;  %v287_v25 = vcombine.low %v285_v22, %v285_v22  ;;  %v250_v26 = vld [vmem:[%s989_s23] sm:$0x3f]  ;;  %v301_v38 = vrot.slane %v285_v22, %v984_v6 }
  0x16   : > { %v353_v27 = vld [vmem:[%s989_s23] sm:$0x3f]  ;;  %v400_v30 = vrot.slane %v386_v29, %v984_v6  ;;  %v259_v32 = vrot.slane %v250_v26, %v984_v6  ;;  %v252_v37 = vcombine.high %v250_v26, %v250_v26  ;;  %vm432_vm15 = vcmask 1039360  }
  0x17   : > { %v294_v31 = vrot.slane %v287_v25, %v984_v6  ;;  %v355_v33 = vcombine.low %v353_v27, %v353_v27  ;;  %v320_v34 = vld [vmem:[%s989_s23] sm:$0x3f]  ;;  %v369_v41 = vrot.slane %v353_v27, %v984_v6  ;;  %vm470_vm0 = vcmask 410624   ;;  %s245_s23 = scalar_lea.vmem %s1095_s5, %s847_s15 }
  0x18   : > { %458 = vrot.lane.b32.xlu0 %v450_v16, %s932_s26  ;;  %493 = vrot.lane.b32.xlu1 %v490_v17, %s933_s27  ;;  %404 = vst.msk [vmem:[#allocation2 + $0x20] sm:$0x3] %vm281_vm8, %v400_v30  ;;  %v329_v36 = vrot.slane %v320_v34, %v984_v6  ;;  %v266_v39 = vrot.slane %v252_v37, %v984_v6  ;;  %vm498_vm1 = vcmask 900096   ;;  %vm465_vm2 = vcmask 908288   ;;  %v538_v37 = vld [vmem:[%s1092_s2] sm:$0xf] }
  0x19   : > { %v362_v35 = vrot.slane %v355_v33, %v984_v6  ;;  %v322_v40 = vcombine.high %v320_v34, %v320_v34  ;;  %vm312_vm3 = vcmask 1043602   ;;  %vm313_vm4 = vcmask 1047558  }
  0x1a   : > { %vm307_vm5 = vcmask 146432   ;;  %vm277_vm6 = vcmask 1041560   ;;  %vm278_vm7 = vcmask 1045508   ;;  %vm272_vm9 = vcmask 154624  }
  0x1b   : > { %v336_v42 = vrot.slane %v322_v40, %v984_v6  ;;  %v691_v40 = vsub.s32 1, %v980_v4 }
  0x1c   : > { %526 = vrot.lane.b32.xlu0 %v523_v19, %s930_s24  ;;  %424 = vrot.lane.b32.xlu1 %v416_v20, %s931_s25 }
  0x20   : > { %491 = vrot.lane.b32.xlu0 %v483_v23, %s933_s27  ;;  %460 = vrot.lane.b32.xlu1 %v457_v24, %s932_s26 }
  0x24   : > { %302 = vrot.lane.b32.xlu1 %v294_v31, %s935_s28  ;;  %267 = vrot.lane.b32.xlu0 %v259_v32, %s936_s29 }
  0x28   : > { %370 = vrot.lane.b32.xlu1 %v362_v35, %s937_s30  ;;  %337 = vrot.lane.b32.xlu0 %v329_v36, %s938_s6 }
  0x2c   : > { %304 = vrot.lane.b32.xlu1 %v301_v38, %s935_s28  ;;  %269 = vrot.lane.b32.xlu0 %v266_v39, %s936_s29  ;;  %v687_v39 = vsub.s32 0, %v980_v4 }
  0x30   : > { %372 = vrot.lane.b32.xlu1 %v369_v41, %s937_s30  ;;  %339 = vrot.lane.b32.xlu0 %v336_v42, %s938_s6  ;;  %v247_v41 = vld [vmem:[%s1091_s1] sm:$0x7]  ;;  %v695_v42 = vsub.s32 2, %v980_v4 }
  0x86   : > { %v525_v43 = vpop.permute.xlu0 %524  ;;  %v427_v44 = vpop.permute.xlu1 %426 }
  0x87   : > { %438 = vst.msk [vmem:[#allocation2 + $0x20] sm:$0xc] %vm437_vm10, %v427_v44  ;;  %v528_v49 = vrot.slane %v525_v43, 4  ;;  %v429_v50 = vrot.slane %v427_v44, 4  ;;  %vm593_vm10 = vcmask 1041408   ;;  %v692_v44 = vrot.slane %v247_v41, %v691_v40 }
  0x8a   : > { %v459_v45 = vpop.permute.xlu0 %458  ;;  %v494_v46 = vpop.permute.xlu1 %493 }
  0x8b   : > { %504 = vst.msk [vmem:[#allocation2 + $0x2c] sm:$0xc] %vm503_vm11, %v494_v46  ;;  %v462_v59 = vrot.slane %v459_v45, 4  ;;  %v496_v60 = vrot.slane %v494_v46, 4  ;;  %vm1031_vm11 = vmor %vm313_vm4, %vm312_vm3  ;;  %vm316_vm3 = vcmask 551938  }
  0x8e   : > { %v527_v47 = vpop.permute.xlu0 %526  ;;  %v425_v48 = vpop.permute.xlu1 %424 }
  0x8f   : > { %v529_v51 = vrot.slane %v527_v47, 4  ;;  %537 = vst.msk [vmem:[#allocation2 + $0x38] sm:$0x3] %vm536_vm12, %v527_v47  ;;  %v428_v52 = vrot.slane %v425_v48, 4  ;;  %vm380_vm12 = vcmask 1043466   ;;  %v696_v47 = vrot.slane %v247_v41, %v695_v42 }
  0x91   : > { %v530_v53 = vsel %vm430_vm13, %v528_v49, %v529_v51  ;;  %v431_v54 = vsel %vm430_vm13, %v428_v52, %v429_v50 }
  0x92   : > { %v532_v55 = vsel %vm531_vm14, %v525_v43, %v530_v53  ;;  %v433_v56 = vsel %vm432_vm15, %v425_v48, %v431_v54  ;;  %v492_v57 = vpop.permute.xlu0 %491  ;;  %v461_v58 = vpop.permute.xlu1 %460  ;;  %vm347_vm14 = vcmask 1041544   ;;  %vm375_vm15 = vcmask 7168  }
  0x93   : > { %535 = vst [vmem:[#allocation2 + $0x30] sm:$0x33] %v532_v55  ;;  %436 = vst [vmem:[#allocation2 + $0x18] sm:$0xcc] %v433_v56  ;;  %v495_v61 = vrot.slane %v492_v57, 4  ;;  %v463_v62 = vrot.slane %v461_v58, 4  ;;  %v688_v43 = vrot.slane %v247_v41, %v687_v39 }
  0x94   : > { %471 = vst.msk [vmem:[#allocation2 + $0x2c] sm:$0x3] %vm470_vm0, %v461_v58  ;;  %vm1041_vm0 = vmor %vm313_vm4, %vm380_vm12  ;;  %vm589_vm4 = vcmask 293888  }
  0x95   : > { %v497_v63 = vsel %vm430_vm13, %v495_v61, %v496_v60  ;;  %v464_v0 = vsel %vm430_vm13, %v462_v59, %v463_v62  ;;  %vm279_vm13 = vmor %vm278_vm7, %vm277_vm6 }
  0x96   : > { %v499_v1 = vsel %vm498_vm1, %v492_v57, %v497_v63  ;;  %v466_v2 = vsel %vm465_vm2, %v459_v45, %v464_v0  ;;  %v303_v5 = vpop.permute.xlu1 %302  ;;  %v268_v6 = vpop.permute.xlu0 %267  ;;  %v908_v7 = vld [vmem:[#allocation2 + $0x38] ss:$0 sps:$4 sm:$0x33]   ;;  %vm342_vm1 = vcmask 138240   ;;  %vm348_vm2 = vmor %vm278_vm7, %vm347_vm14 }
  0x97   : > { %502 = vst [vmem:[#allocation2 + $0x24] sm:$0xcc] %v499_v1  ;;  %469 = vst [vmem:[#allocation2 + $0x24] sm:$0x33] %v466_v2  ;;  %v306_v8 = vrot.slane %v303_v5, 4  ;;  %v271_v9 = vrot.slane %v268_v6, 4 }
  0x98   : > { %v601_v10 = vsel %vm593_vm10, %v908_v7, 0 }
  0x99   : > { %v308_v11 = vsel %vm307_vm5, %v306_v8, %v303_v5  ;;  %v273_v12 = vsel %vm272_vm9, %v271_v9, %v268_v6  ;;  %869 = vmatpush3.bf16.msra.mxu1 %v601_v10 }
  0x9a   : > { %315 = vst.msk [vmem:[#allocation2] sm:$0xcc] %vm1031_vm11, %v308_v11  ;;  %v371_v14 = vpop.permute.xlu1 %370  ;;  %v338_v15 = vpop.permute.xlu0 %337  ;;  %v547_v16 = vld [vmem:[#allocation2 + $0x30] sm:$0x33]  ;;  %870 = vmatprep.subr.bf16.mxu1 %v934_v28 }
  0x9b   : > { %280 = vst.msk [vmem:[#allocation2] sm:$0x33] %vm279_vm13, %v273_v12  ;;  %v912_v17 = vld [vmem:[#allocation2 + $0x20] ss:$12 sps:$4 sm:$0xff]   ;;  %v374_v18 = vrot.slane %v371_v14, 4  ;;  %v341_v19 = vrot.slane %v338_v15, 4  ;;  %v857_v20 = vcombine.high %v547_v16, %v547_v16  ;;  %v856_v21 = vcombine.low %v547_v16, %v547_v16 }
  0x9d   : > { %v376_v22 = vsel %vm375_vm15, %v374_v18, %v371_v14  ;;  %v343_v23 = vsel %vm342_vm1, %v341_v19, %v338_v15  ;;  %859 = vmatprep.subr.msk.bf16.mxu0 %vm593_vm10, %v857_v20  ;;  %v595_v24 = vsel %vm593_vm10, %v856_v21, 0  ;;  %871 = vmatpush3.bf16.msra.mxu1 %v912_v17 }
  0x9e   : > { %382 = vst.msk [vmem:[#allocation2 + $0xc] sm:$0xcc] %vm1041_vm0, %v376_v22  ;;  %614 = vmatpush1.bf16.msra.mxu0 %v595_v24  ;;  %v305_v25 = vpop.permute.xlu1 %304  ;;  %v270_v26 = vpop.permute.xlu0 %269  ;;  %v913_v27 = vld [vmem:[#allocation2 + $0x1c] ss:$12 sps:$4 sm:$0xff]   ;;  %872 = vmatprep.subr.bf16.mxu1 %v934_v28  ;;  %v915_v31 = vld [vmem:[#allocation2 + $0x18] ss:$12 sps:$4 sm:$0xff]  }
  0x9f   : > { %349 = vst.msk [vmem:[#allocation2 + $0xc] sm:$0x33] %vm348_vm2, %v343_v23  ;;  %v309_v29 = vsel %vm307_vm5, %v306_v8, %v305_v25  ;;  %v274_v30 = vsel %vm272_vm9, %v271_v9, %v270_v26  ;;  %615 = vmatprep.subr.bf16.mxu0 %v913_v27 }
  0xa0   : > { %317 = vst.msk [vmem:[#allocation2 + $0x8] sm:$0xc] %vm316_vm3, %v309_v29 }
  0xa1   : > { %282 = vst.msk [vmem:[#allocation2 + $0x8] sm:$0x3] %vm281_vm8, %v274_v30 }
  0xa2   : > { %616 = vmatpush1.bf16.msra.mxu0 %v915_v31  ;;  %v373_v32 = vpop.permute.xlu1 %372  ;;  %v340_v33 = vpop.permute.xlu0 %339 }
  0xa3   : > { %v377_v34 = vsel %vm375_vm15, %v374_v18, %v373_v32  ;;  %v344_v35 = vsel %vm342_vm1, %v341_v19, %v340_v33 }
  0xa4   : > { %383 = vst.msk [vmem:[#allocation2 + $0x14] sm:$0xc] %vm316_vm3, %v377_v34 }
  0xa5   : > { %350 = vst.msk [vmem:[#allocation2 + $0x14] sm:$0x3] %vm281_vm8, %v344_v35  ;;  %vm704_vm8 = vcmask 556032  }
  0xa6   : > { %v916_v28 = vld [vmem:[#allocation2 + $0x4] ss:$12 sps:$4 sm:$0xff]   ;;  %v918_v36 = vld [vmem:[#allocation2] ss:$12 sps:$4 sm:$0xff]  }
  0xa7   : > { %617 = vmatprep.subr.bf16.mxu0 %v916_v28 }
  0xa8   : > { %618 = vmatpush1.bf16.msra.mxu0 %v918_v36 }
  0xab   : > { %860 = vmatmul.mubr.msk.bf16.vlgmr.msra.gmra.mxu0 %vm589_vm4, %v538_v37 }
  0xac   : > { %v919_v38 = vld [vmem:[#allocation2 + $0x8] ss:$12 sps:$4 sm:$0xff]  }
  0xad   : > { %873 = vmatpush3.bf16.msra.mxu1 %v919_v38 }
  0xb0   : > { %875 = vmatmul.mubr.msk.bf16.vlgmr.msra.gmra.mxu1 %vm589_vm4, %v538_v37 }
 0x16b   : > { %v637_v45 = vpop.f32.mrf.mxu0 }
 0x16c   : > { %720 = vst [vmem:[%s237_s14] sm:$0xff] %v637_v45  ;;  %v700_v48 = vmul.f32 %v688_v43, %v637_v45 }
 0x16d   : > { %v639_v46 = vpop.f32.mrf.mxu0 }
 0x16e   : > { %v701_v49 = vmul.f32 %v692_v44, %v639_v46  ;;  %721 = vst [vmem:[%s237_s14 + $0x8] sm:$0xff] %v639_v46  ;;  %v711_v55 = vmul.f32 %v700_v48, %v637_v45 }
 0x16f   : > { %v641_v50 = vpop.f32.mrf.mxu0 }
 0x170   : > { %v712_v51 = vmul.f32 %v701_v49, %v639_v46  ;;  %v678_v52 = vpop.f32.mrf.mxu1  ;;  %v703_v4 = vadd.f32 %v701_v49, %v700_v48 }
 0x171   : > { %v702_v53 = vmul.f32 %v696_v47, %v678_v52  ;;  %722 = vst.msk [vmem:[%s237_s14 + $0x10] sm:$0xff] %vm704_vm8, %v678_v52  ;;  %v642_v54 = vpop.f32.mrf.mxu0 }
 0x172   : > { %v876_v56 = vpop.f32.mrf.mxu1  ;;  %v714_v61 = vadd.f32 %v712_v51, %v711_v55 }
 0x173   : > { %v713_v57 = vmul.f32 %v702_v53, %v678_v52  ;;  %v705_v58 = vsel %vm704_vm8, %v702_v53, 0.0 }
 0x174   : > { %v681_v59 = vpop.f32.mrf.mxu1  ;;  %v706_v60 = vadd.f32 %v705_v58, %v703_v4 }
 0x175   : > { %v715_v62 = vsel %vm704_vm8, %v713_v57, 0.0 }
 0x176   : > { %707 = vadd.xlane.f32.xlu0 %v706_v60  ;;  %v877_v63 = vpop.f32.mrf.mxu1  ;;  %v716_v0 = vadd.f32 %v715_v62, %v714_v61 }
 0x178   : > { %717 = vadd.xlane.f32.xlu1 %v716_v0 }
 0x1ff   : > { %v708_v1 = vpop.xlane.xlu0 %707 }
 0x200   : > { %710 = vst.msk [vmem:[%s241_s20] sm:$0xff] %vm375_vm15, %v708_v1 }
 0x201   : > { %v718_v2 = vpop.xlane.xlu1 %717 }
 0x202   : > { %719 = vst.msk [vmem:[%s245_s23] sm:$0xff] %vm375_vm15, %v718_v2 }
 0x203 PF: > { %s16_s18 = sadd.s32 1, %s926_s18  }
 0x204   : > { %p13_p4 = scmp.ge.s32.totalorder %s16_s18, 4  }
 0x206   :  { %15 = sbr.rel (!%p13_p4) target bundleno = 1 (0x1), region = 86 }

// kernel: resnet_block_forward.4
= control target key start
LH: loop header
LB: loop body
LE: loop exit
PB: predicated region body
PF: predicated region fallthrough
CT: control target
= control target key end

     0   :  { %s961_s24 = smov 0   ;;  %s1070_s0 = inlined_call_operand.vmem [shape: f32[2,8,324], index: 0, kind: input, shape index: {}]   ;;  %s1071_s1 = inlined_call_operand.vmem [shape: f32[8,1], index: 1, kind: input, shape index: {}]   ;;  %s1072_s2 = inlined_call_operand.vmem [shape: f32[8,1], index: 2, kind: input, shape index: {}]   ;;  %s1073_s3 = inlined_call_operand.vmem [shape: f32[1,324], index: 3, kind: input, shape index: {}]   ;;  %s1074_s4 = inlined_call_operand.vmem [shape: bf16[8,72], index: 4, kind: input, shape index: {}]   ;;  %s1075_s5 = inlined_call_operand.vmem [shape: f32[2,8,324], index: 5, kind: output, shape index: {0}]   ;;  %s1076_s6 = inlined_call_operand.vmem [shape: f32[2,8,1], index: 6, kind: output, shape index: {1}]   ;;  %s1077_s7 = inlined_call_operand.vmem [shape: f32[2,8,1], index: 7, kind: output, shape index: {2}]  }
   0x1 LB: > { %s817_s25 = sadd.s32 4294967295, %s908_s24   ;;  %p821_p0 = scmp.ge.s32.totalorder %s908_s24, 1  ;;  %s908_s24 = sphi %s961_s24, %s18_s24  }
   0x2   : > { %p242_p1 = scmp.lt.s32.totalorder %s908_s24, 3 }
   0x4   : > { %p243_p2 = pnand %p821_p0, %p242_p1 }
   0x5   : > { %p282_p3 = scmp.lt.s32.totalorder (!%p243_p2), %s817_s25, 1  ;;  %s911_s13 = smov (!%p243_p2), 111  }
   0x6   : > { %246 = sbr.rel (%p243_p2) target bundleno = 647 (0x287), region = 40  ;;  %s912_s14 = smov (!%p243_p2), 109  }
   0x7   : > { %s914_s15 = smov (!%p243_p2), 110   ;;  %s915_s16 = smov (!%p243_p2), 127  }
   0x8   : > { %s916_s17 = smov (!%p243_p2), 17   ;;  %s917_s18 = smov (!%p243_p2), 19  }
   0x9   : > { %s918_s19 = smov (!%p243_p2), 1   ;;  %s919_s20 = smov (!%p243_p2), 18  }
   0xb   : > { %v305_v0 = vld [vmem:[%s1071_s1] sm:$0xff]  ;;  %v910_v1 = vmov 0   ;;  %s1079_s25 = smov (!%p282_p3, %s817_s25), 1  ;;  %v327_v3 = vlaneseq  ;;  %vm475_vm0 = vcmask 552328   ;;  %vm443_vm1 = vcmask 552344  }
   0xc   : > { %890 = vset.pattern.permute.xlu0 %v910_v1  ;;  %628 = vmatprep.mubr.bf16.mxu0 %v910_v1  ;;  %v314_v2 = vld [vmem:[%s1072_s2] sm:$0xff]  ;;  %s870_s30 = smul.u32 24, %s1079_s25  ;;  %476 = vst.msk [vmem:[#allocation2 + $0x68] sm:$0xf] %vm475_vm0, %v910_v1  ;;  %vm459_vm2 = vcmask 552336   ;;  %vm372_vm3 = vcmask 551936  }
   0xd   : > { %308 = vperm.xlu0 %890, %v305_v0   ;;  %v328_v4 = vshrl.u32 %v327_v3, 7  ;;  %v301_v12 = vld [vmem:[%s1073_s3] sm:$0x7]  ;;  %444 = vst.msk [vmem:[#allocation2 + $0x50] sm:$0xf] %vm443_vm1, %v910_v1  ;;  %vm390_vm4 = vcmask 134144  }
   0xe   : > { %s286_s10 = scalar_lea.vmem %s1070_s0, %s870_s30  ;;  %460 = vst.msk [vmem:[#allocation2 + $0x5c] sm:$0xf] %vm459_vm2, %v910_v1  ;;  %v913_v31 = vmov 0.0   ;;  %vm426_vm5 = vcmask 552472   ;;  %vm348_vm6 = vcmask 150528   ;;  %vm406_vm7 = vcmask 3072   ;;  %s291_s27 = scalar_lea.vmem %s1075_s5, %s870_s30 }
   0xf   : > { %v302_v6 = vld [vmem:[%s286_s10] sm:$0xff]  ;;  %v303_v7 = vld [vmem:[%s286_s10 + $0x8] sm:$0xff]  ;;  %v304_v8 = vld [vmem:[%s286_s10 + $0x10] sm:$0xff]  ;;  %v329_v9 = vsub.s32 0, %v328_v4  ;;  %v333_v10 = vsub.s32 1, %v328_v4  ;;  %v337_v11 = vsub.s32 2, %v328_v4  ;;  %856 = vmatprep.subr.bf16.mxu1 %v913_v31 }
  0x10   : > { %391 = vst.msk [vmem:[#allocation2 + $0x18] sm:$0xf] %vm390_vm4, %v910_v1  ;;  %vm374_vm8 = vcmask 142336   ;;  %vm920_vm9 = vmmov 0   ;;  %vm489_vm10 = vcmask 396288   ;;  %vm434_vm11 = vcmask 1043456  }
  0x11   : > { %317 = vperm.xlu0 %890, %v314_v2   ;;  %v989_v17 = vrot.slane %v301_v12, %v329_v9  ;;  %v991_v18 = vrot.slane %v301_v12, %v333_v10  ;;  %v993_v22 = vrot.slane %v301_v12, %v337_v11  ;;  %427 = vst.msk [vmem:[#allocation2 + $0x44] sm:$0xf] %vm426_vm5, %v910_v1  ;;  %vm484_vm12 = vcmask 891904   ;;  %s824_s28 = sshll.u32 %s1079_s25, 3 }
  0x12   : > { %349 = vst.msk [vmem:[#allocation2] sm:$0xf] %vm348_vm6, %v910_v1  ;;  %866 = vmatprep.mubr.msk.bf16.mxu1 %vm920_vm9, %v913_v31  ;;  %vm457_vm13 = vcmask 412672   ;;  %vm452_vm14 = vcmask 908288   ;;  %vm369_vm15 = vcmask 1047556   ;;  %vm402_vm0 = vcmask 1043592   ;;  %s295_s8 = scalar_lea.vmem %s1076_s6, %s824_s28  ;;  %s299_s11 = scalar_lea.vmem %s1077_s7, %s824_s28 }
  0x13   : > { %407 = vst.msk [vmem:[#allocation2 + $0x24] sm:$0xf] %vm406_vm7, %v910_v1  ;;  %vm473_vm1 = vcmask 404480   ;;  %vm397_vm2 = vcmask 138240   ;;  %vm403_vm4 = vmor %vm369_vm15, %vm402_vm0  ;;  %vm468_vm5 = vcmask 900096   ;;  %vm368_vm6 = vcmask 1043608  }
  0x14   : > { %375 = vst.msk [vmem:[#allocation2 + $0xc] sm:$0xf] %vm374_vm8, %v910_v1  ;;  %vm441_vm7 = vcmask 543744   ;;  %vm363_vm8 = vcmask 154624   ;;  %vm436_vm9 = vcmask 1039360   ;;  %vm381_vm0 = vcmask 146432  }
  0x88   : > { %v309_v5 = vpop.permute.xlu0 %308 }
  0x89   : > { %v311_v13 = vmul.f32 %v309_v5, %v302_v6  ;;  %v312_v14 = vmul.f32 %v309_v5, %v303_v7  ;;  %v313_v15 = vmul.f32 %v309_v5, %v304_v8 }
  0x8c   : > { %v318_v16 = vpop.permute.xlu0 %317 }
  0x8d   : > { %v320_v19 = vadd.f32 %v318_v16, %v311_v13  ;;  %v321_v20 = vadd.f32 %v318_v16, %v312_v14  ;;  %v322_v21 = vadd.f32 %v318_v16, %v313_v15 }
  0x8f   : > { %v323_v23 = vmax.f32 %v320_v19, 0.0  ;;  %v324_v24 = vmax.f32 %v321_v20, 0.0  ;;  %v325_v25 = vmax.f32 %v322_v21, 0.0 }
  0x91   : > { %v342_v26 = vmul.f32 %v989_v17, %v323_v23  ;;  %v343_v27 = vmul.f32 %v991_v18, %v324_v24  ;;  %v344_v28 = vmul.f32 %v993_v22, %v325_v25 }
  0x93   : > { %v999_v29 = vpack.c.bf16 %v343_v27, %v342_v26  ;;  %v849_v30 = vpack.c.bf16 %v344_v28, %v344_v28 }
  0x95   : > { %445 = vrot.lane.b32.xlu0 %v999_v29, %s911_s13  ;;  %477 = vrot.lane.b32.xlu1 %v999_v29, %s912_s14  ;;  %425 = vst.msk [vmem:[#allocation2 + $0x38] sm:$0xf] %vm372_vm3, %v849_v30 }
  0x99   : > { %461 = vrot.lane.b32.xlu0 %v999_v29, %s914_s15  ;;  %479 = vrot.lane.b32.xlu1 %v849_v30, %s912_s14 }
  0x9d   : > { %428 = vrot.lane.b32.xlu0 %v999_v29, %s915_s16  ;;  %447 = vrot.lane.b32.xlu1 %v849_v30, %s911_s13 }
  0xa1   : > { %392 = vrot.lane.b32.xlu0 %v999_v29, %s916_s17  ;;  %463 = vrot.lane.b32.xlu1 %v849_v30, %s914_s15 }
  0xa5   : > { %358 = vrot.lane.b32.xlu0 %v999_v29, %s917_s18  ;;  %430 = vrot.lane.b32.xlu1 %v849_v30, %s915_s16 }
  0xa9   : > { %394 = vrot.lane.b32.xlu0 %v849_v30, %s916_s17  ;;  %408 = vrot.lane.b32.xlu1 %v999_v29, %s918_s19 }
  0xad   : > { %360 = vrot.lane.b32.xlu0 %v849_v30, %s917_s18  ;;  %376 = vrot.lane.b32.xlu1 %v999_v29, %s919_s20 }
  0xb1   : > { %410 = vrot.lane.b32.xlu1 %v849_v30, %s918_s19 }
  0xb5   : > { %378 = vrot.lane.b32.xlu1 %v849_v30, %s919_s20 }
 0x107   : > { %v446_v32 = vpop.permute.xlu0 %445  ;;  %v478_v33 = vpop.permute.xlu1 %477 }
 0x108   : > { %v481_v36 = vrot.slane %v478_v33, 4  ;;  %v449_v42 = vrot.slane %v446_v32, 4 }
 0x10b   : > { %v462_v34 = vpop.permute.xlu0 %461  ;;  %v480_v35 = vpop.permute.xlu1 %479 }
 0x10c   : > { %v482_v37 = vrot.slane %v480_v35, 4  ;;  %490 = vst.msk [vmem:[#allocation2 + $0x68] sm:$0xf] %vm489_vm10, %v480_v35  ;;  %v465_v52 = vrot.slane %v462_v34, 4  ;;  %vm370_vm10 = vmor %vm369_vm15, %vm368_vm6 }
 0x10e   : > { %v483_v38 = vsel %vm434_vm11, %v481_v36, %v482_v37 }
 0x10f   : > { %v485_v39 = vsel %vm484_vm12, %v478_v33, %v483_v38  ;;  %v429_v40 = vpop.permute.xlu0 %428  ;;  %v448_v41 = vpop.permute.xlu1 %447  ;;  %vm418_vm12 = vcmask 1043464  }
 0x110   : > { %v450_v43 = vrot.slane %v448_v41, 4  ;;  %458 = vst.msk [vmem:[#allocation2 + $0x50] sm:$0xf] %vm457_vm13, %v448_v41  ;;  %v841_v44 = vcombine.high %v485_v39, %v485_v39  ;;  %v840_v45 = vcombine.low %v485_v39, %v485_v39  ;;  %v432_v58 = vrot.slane %v429_v40, 4 }
 0x111   : > { %vm413_vm13 = vcmask 7168  }
 0x112   : > { %v451_v46 = vsel %vm434_vm11, %v449_v42, %v450_v43  ;;  %843 = vmatprep.subr.msk.bf16.mxu0 %vm434_vm11, %v841_v44  ;;  %v588_v47 = vsel %vm434_vm11, %v840_v45, 0 }
 0x113   : > { %v453_v48 = vsel %vm452_vm14, %v446_v32, %v451_v46  ;;  %v393_v49 = vpop.permute.xlu0 %392  ;;  %v464_v50 = vpop.permute.xlu1 %463  ;;  %v891_v51 = vld [vmem:[#allocation2 + $0x68] ss:$0 sps:$4 sm:$0xff]   ;;  %603 = vmatpush1.bf16.msra.mxu0 %v588_v47  ;;  %vm419_vm14 = vmor %vm369_vm15, %vm418_vm12  ;;  %v491_v32 = vld [vmem:[%s1074_s4] sm:$0xf] }
 0x114   : > { %v396_v53 = vrot.slane %v393_v49, 4  ;;  %v466_v54 = vrot.slane %v464_v50, 4  ;;  %474 = vst.msk [vmem:[#allocation2 + $0x5c] sm:$0xf] %vm473_vm1, %v464_v50  ;;  %v594_v55 = vsel %vm434_vm11, %v891_v51, 0 }
 0x115   : > { %857 = vmatpush3.bf16.msra.mxu1 %v594_v55 }
 0x116   : > { %v398_v56 = vsel %vm397_vm2, %v396_v53, %v393_v49  ;;  %v467_v57 = vsel %vm434_vm11, %v465_v52, %v466_v54  ;;  %858 = vmatprep.subr.bf16.mxu1 %v913_v31 }
 0x117   : > { %404 = vst.msk [vmem:[#allocation2 + $0x18] sm:$0xff] %vm403_vm4, %v398_v56  ;;  %v469_v59 = vsel %vm468_vm5, %v462_v34, %v467_v57  ;;  %v359_v60 = vpop.permute.xlu0 %358  ;;  %v431_v61 = vpop.permute.xlu1 %430 }
 0x118   : > { %v362_v62 = vrot.slane %v359_v60, 4  ;;  %v433_v63 = vrot.slane %v431_v61, 4  ;;  %442 = vst.msk [vmem:[#allocation2 + $0x44] sm:$0xf] %vm441_vm7, %v431_v61  ;;  %v838_v0 = vcombine.high %v453_v48, %v469_v59  ;;  %v837_v1 = vcombine.low %v453_v48, %v469_v59 }
 0x11a   : > { %v364_v2 = vsel %vm363_vm8, %v362_v62, %v359_v60  ;;  %v435_v3 = vsel %vm434_vm11, %v432_v58, %v433_v63  ;;  %604 = vmatprep.subr.bf16.mxu0 %v838_v0  ;;  %vm386_vm11 = vcmask 1043600  }
 0x11b   : > { %371 = vst.msk [vmem:[#allocation2] sm:$0xff] %vm370_vm10, %v364_v2  ;;  %v437_v4 = vsel %vm436_vm9, %v429_v40, %v435_v3  ;;  %v395_v5 = vpop.permute.xlu0 %394  ;;  %v409_v6 = vpop.permute.xlu1 %408  ;;  %v892_v7 = vld [vmem:[#allocation2 + $0x50] ss:$12 sps:$4 sm:$0xff]   ;;  %605 = vmatpush1.bf16.msra.mxu0 %v837_v1  ;;  %vm387_vm1 = vmor %vm369_vm15, %vm386_vm11  ;;  %vm582_vm15 = vcmask 588800  }
 0x11c   : > { %v399_v8 = vsel %vm397_vm2, %v396_v53, %v395_v5  ;;  %v412_v9 = vrot.slane %v409_v6, 4  ;;  %v835_v10 = vcombine.high %v999_v29, %v437_v4  ;;  %v834_v11 = vcombine.low %v999_v29, %v437_v4  ;;  %859 = vmatpush3.bf16.msra.mxu1 %v892_v7 }
 0x11d   : > { %405 = vst.msk [vmem:[#allocation2 + $0x20] sm:$0xf] %vm372_vm3, %v399_v8  ;;  %860 = vmatprep.subr.bf16.mxu1 %v913_v31 }
 0x11e   : > { %v414_v12 = vsel %vm413_vm13, %v412_v9, %v409_v6  ;;  %606 = vmatprep.subr.bf16.mxu0 %v835_v10 }
 0x11f   : > { %420 = vst.msk [vmem:[#allocation2 + $0x24] sm:$0xff] %vm419_vm14, %v414_v12  ;;  %v361_v13 = vpop.permute.xlu0 %360  ;;  %v377_v14 = vpop.permute.xlu1 %376  ;;  %v893_v15 = vld [vmem:[#allocation2 + $0x38] ss:$12 sps:$4 sm:$0xff]   ;;  %607 = vmatpush1.bf16.msra.mxu0 %v834_v11 }
 0x120   : > { %v365_v16 = vsel %vm363_vm8, %v362_v62, %v361_v13  ;;  %v380_v19 = vrot.slane %v377_v14, 4  ;;  %861 = vmatpush3.bf16.msra.mxu1 %v893_v15 }
 0x121   : > { %373 = vst.msk [vmem:[#allocation2 + $0x8] sm:$0xf] %vm372_vm3, %v365_v16  ;;  %862 = vmatprep.subr.bf16.mxu1 %v913_v31 }
 0x122   : > { %v382_v20 = vsel %vm381_vm0, %v380_v19, %v377_v14 }
 0x123   : > { %388 = vst.msk [vmem:[#allocation2 + $0xc] sm:$0xff] %vm387_vm1, %v382_v20  ;;  %v411_v21 = vpop.permute.xlu1 %410 }
 0x124   : > { %v415_v23 = vsel %vm413_vm13, %v412_v9, %v411_v21 }
 0x125   : > { %421 = vst.msk [vmem:[#allocation2 + $0x2c] sm:$0xf] %vm372_vm3, %v415_v23 }
 0x126   : > { %v894_v24 = vld [vmem:[#allocation2 + $0x1c] ss:$12 sps:$4 sm:$0xff]   ;;  %v896_v25 = vld [vmem:[#allocation2 + $0x18] ss:$12 sps:$4 sm:$0xff]  }
 0x127   : > { %v379_v26 = vpop.permute.xlu1 %378  ;;  %608 = vmatprep.subr.bf16.mxu0 %v894_v24 }
 0x128   : > { %v383_v27 = vsel %vm381_vm0, %v380_v19, %v379_v26  ;;  %609 = vmatpush1.bf16.msra.mxu0 %v896_v25 }
 0x129   : > { %389 = vst.msk [vmem:[#allocation2 + $0x14] sm:$0xf] %vm372_vm3, %v383_v27  ;;  %vm681_vm3 = vcmask 556032  }
 0x12a   : > { %v897_v28 = vld [vmem:[#allocation2 + $0x4] ss:$12 sps:$4 sm:$0xff]   ;;  %v899_v29 = vld [vmem:[#allocation2] ss:$12 sps:$4 sm:$0xff]  }
 0x12b   : > { %610 = vmatprep.subr.bf16.mxu0 %v897_v28 }
 0x12c   : > { %v900_v30 = vld [vmem:[#allocation2 + $0x20] ss:$12 sps:$4 sm:$0xff]   ;;  %611 = vmatpush1.bf16.msra.mxu0 %v899_v29 }
 0x12d   : > { %863 = vmatpush3.bf16.msra.mxu1 %v900_v30 }
 0x12e   : > { %864 = vmatprep.subr.bf16.mxu1 %v913_v31 }
 0x12f   : > { %844 = vmatmul.mubr.msk.bf16.vlgmr.msra.gmra.mxu0 %vm582_vm15, %v491_v32 }
 0x130   : > { %v901_v33 = vld [vmem:[#allocation2 + $0x8] ss:$12 sps:$4 sm:$0xff]  }
 0x131   : > { %865 = vmatpush3.bf16.msra.mxu1 %v901_v33 }
 0x134   : > { %867 = vmatmul.mubr.msk.bf16.vlgmr.msra.gmra.mxu1 %vm582_vm15, %v491_v32 }
 0x1ef   : > { %v630_v34 = vpop.f32.mrf.mxu0 }
 0x1f0   : > { %697 = vst [vmem:[%s291_s27] sm:$0xff] %v630_v34  ;;  %v677_v36 = vmul.f32 %v630_v34, %v989_v17 }
 0x1f1   : > { %v632_v35 = vpop.f32.mrf.mxu0 }
 0x1f2   : > { %v678_v37 = vmul.f32 %v632_v35, %v991_v18  ;;  %698 = vst [vmem:[%s291_s27 + $0x8] sm:$0xff] %v632_v35  ;;  %v688_v42 = vmul.f32 %v677_v36, %v630_v34 }
 0x1f3   : > { %v634_v38 = vpop.f32.mrf.mxu0 }
 0x1f4   : > { %v689_v31 = vmul.f32 %v678_v37, %v632_v35  ;;  %v671_v39 = vpop.f32.mrf.mxu1  ;;  %v680_v44 = vadd.f32 %v678_v37, %v677_v36 }
 0x1f5   : > { %v679_v40 = vmul.f32 %v671_v39, %v993_v22  ;;  %699 = vst.msk [vmem:[%s291_s27 + $0x10] sm:$0xff] %vm681_vm3, %v671_v39  ;;  %v635_v41 = vpop.f32.mrf.mxu0 }
 0x1f6   : > { %v868_v43 = vpop.f32.mrf.mxu1  ;;  %v691_v17 = vadd.f32 %v689_v31, %v688_v42 }
 0x1f7   : > { %v690_v45 = vmul.f32 %v679_v40, %v671_v39  ;;  %v682_v46 = vsel %vm681_vm3, %v679_v40, 0.0 }
 0x1f8   : > { %v674_v47 = vpop.f32.mrf.mxu1  ;;  %v683_v48 = vadd.f32 %v682_v46, %v680_v44 }
 0x1f9   : > { %v692_v49 = vsel %vm681_vm3, %v690_v45, 0.0 }
 0x1fa   : > { %v869_v18 = vpop.f32.mrf.mxu1  ;;  %684 = vadd.xlane.f32.xlu0 %v683_v48  ;;  %v693_v50 = vadd.f32 %v692_v49, %v691_v17 }
 0x1fc   : > { %694 = vadd.xlane.f32.xlu1 %v693_v50 }
 0x283   : > { %v685_v22 = vpop.xlane.xlu0 %684 }
 0x284   : > { %687 = vst.msk [vmem:[%s295_s8] sm:$0xff] %vm413_vm13, %v685_v22 }
 0x285   : > { %v695_v51 = vpop.xlane.xlu1 %694 }
 0x286   : > { %696 = vst.msk [vmem:[%s299_s11] sm:$0xff] %vm413_vm13, %v695_v51 }
 0x287 PF: > { %s18_s24 = sadd.s32 1, %s908_s24  }
 0x288   : > { %p15_p4 = scmp.ge.s32.totalorder %s18_s24, 4  }
 0x28a   :  { %17 = sbr.rel (!%p15_p4) target bundleno = 1 (0x1), region = 94 }

</bundles_post_ra>
